<compile_context>
chip_gen: v7x
topology: tpu7x:2x2x1
jax: 0.10.0
libtpu: 0.0.40
codegen_flags: <defaults>
</compile_context>

<pallas_src>
import jax
import jax.numpy as jnp
import numpy as np
from jax.experimental import pallas as pl
from jax.experimental.pallas import tpu as pltpu


# ------------------------------------------------------------------ kernels

def conv_proj_kernel(p_ref, wbig_ref, wih_ref, b0_ref, g_ref):
    # p_ref   : (4*N, P*Kp) im2col patches; rows = (pool-corner, frame),
    #           lanes = (pooled-spatial s, k); column k==K holds 1.0 (bias).
    # wbig_ref: (P*Kp, P*Cout) block-diagonal conv weight (bias folded in).
    # wih_ref : (P*Cout, 4H) LSTM layer-0 input weights, rows permuted to the
    #           kernel's natural (s*Cout + c) feature order.
    # b0_ref  : (1, 4H)
    # g_ref   : (N, 4H) layer-0 gate pre-activations, frames time-major.
    y = jnp.dot(p_ref[...], wbig_ref[...], preferred_element_type=jnp.float32)
    n = g_ref.shape[0]
    feats = jnp.maximum(jnp.maximum(y[0:n], y[n:2 * n]),
                        jnp.maximum(y[2 * n:3 * n], y[3 * n:4 * n]))   # 2x2 maxpool
    g_ref[...] = (jnp.dot(feats, wih_ref[...], preferred_element_type=jnp.float32)
                  + b0_ref[...])


def lstm_head_kernel(g0_ref, whh0_ref, wih1_ref, whh1_ref, b1_ref,
                     num_ref, wnum_ref, bnum_ref, w1h_ref, w1n_ref, bfc1_ref,
                     w2_ref, b2_ref, o_ref, h0, c0, h1, c1):
    t = pl.program_id(0)
    H = h0.shape[1]

    @pl.when(t == 0)
    def _():
        h0[...] = jnp.zeros_like(h0)
        c0[...] = jnp.zeros_like(c0)
        h1[...] = jnp.zeros_like(h1)
        c1[...] = jnp.zeros_like(c1)

    def gates_to_hc(g, c):
        i = jax.nn.sigmoid(g[:, 0:H])
        f = jax.nn.sigmoid(g[:, H:2 * H])
        gg = jnp.tanh(g[:, 2 * H:3 * H])
        o = jax.nn.sigmoid(g[:, 3 * H:4 * H])
        c_new = f * c + i * gg
        return o * jnp.tanh(c_new), c_new

    # layer 0: input projection + bias precomputed in conv_proj_kernel
    g0 = g0_ref[...] + jnp.dot(h0[...], whh0_ref[...],
                               preferred_element_type=jnp.float32)
    hn0, cn0 = gates_to_hc(g0, c0[...])
    h0[...] = hn0
    c0[...] = cn0

    # TODO(synk): nn.LSTM dropout=0.5 acts only between layers in training mode;
    # eval-mode (identity) semantics are implemented here.
    g1 = (jnp.dot(hn0, wih1_ref[...], preferred_element_type=jnp.float32)
          + jnp.dot(h1[...], whh1_ref[...], preferred_element_type=jnp.float32)
          + b1_ref[...])
    hn1, cn1 = gates_to_hc(g1, c1[...])
    h1[...] = hn1
    c1[...] = cn1

    @pl.when(t == pl.num_programs(0) - 1)
    def _():
        # numerical_fc(1 -> 64) as a broadcasted outer product
        num_feat = num_ref[...] * wnum_ref[...] + bnum_ref[...]          # (B, 64)
        # fc1 on concat([h, num]) == h @ W1[:, :128].T + num @ W1[:, 128:].T
        z = (jnp.dot(h1[...], w1h_ref[...], preferred_element_type=jnp.float32)
             + jnp.dot(num_feat, w1n_ref[...], preferred_element_type=jnp.float32)
             + bfc1_ref[...])
        z = jnp.maximum(z, 0.0)                                          # relu
        logit = jnp.sum(z * w2_ref[...], axis=1, keepdims=True) + b2_ref[...]
        o_ref[...] = jax.nn.sigmoid(logit)


# ------------------------------------------------------------------ wrappers

def conv_pool_proj(patches, w_big, wih_perm, b0, n_frames):
    gdim = wih_perm.shape[1]
    args = (patches, w_big, wih_perm, b0)
    return pl.pallas_call(
        conv_proj_kernel,
        out_shape=jax.ShapeDtypeStruct((n_frames, gdim), jnp.float32),
        grid=(1,),
        in_specs=[pl.BlockSpec(a.shape, lambda i, nd=a.ndim: (0,) * nd) for a in args],
        out_specs=pl.BlockSpec((n_frames, gdim), lambda i: (0, 0)),
    )(*args)


def lstm_head(g0_seq, whh0T, wih1T, whh1T, b1, num, wnumT, bnum,
              w1h, w1n, bfc1, w2, b2, hidden):
    T, B, G = g0_seq.shape
    weights = (whh0T, wih1T, whh1T, b1, num, wnumT, bnum, w1h, w1n, bfc1, w2, b2)
    in_specs = [pl.BlockSpec((None, B, G), lambda t: (t, 0, 0))]
    in_specs += [pl.BlockSpec(a.shape, lambda t, nd=a.ndim: (0,) * nd) for a in weights]
    return pl.pallas_call(
        lstm_head_kernel,
        out_shape=jax.ShapeDtypeStruct((B, 1), jnp.float32),
        grid=(T,),
        in_specs=in_specs,
        out_specs=pl.BlockSpec((B, 1), lambda t: (0, 0)),
        scratch_shapes=[pltpu.VMEM((B, hidden), jnp.float32)] * 4,
        compiler_params=pltpu.CompilerParams(dimension_semantics=("arbitrary",)),
    )(g0_seq, *weights)


# ------------------------------------------------------------------ glue

def video_lstm_forward(params, x, numerical):
    B, T, C, Hh, Ww = x.shape
    # reproduce the module's `x.view(B*T, w, h, c)` memory reinterpretation;
    # nn.Conv2d then treats it as NCHW (requires Ww == 3 == conv in_channels).
    xv = x.reshape(B * T, Ww, Hh, C)
    # reorder frames time-major so kernel 1's output feeds the LSTM with a free reshape
    xv = xv.reshape(B, T, Ww, Hh, C).transpose(1, 0, 2, 3, 4).reshape(T * B, Ww, Hh, C)
    N, Cin, Hc, Wc = xv.shape
    Cout = params["conv_w"].shape[0]
    assert Cin == params["conv_w"].shape[1]
    assert Hc % 2 == 0 and Wc % 2 == 0
    Hp, Wp = Hc // 2, Wc // 2
    P = Hp * Wp
    K = Cin * 9
    Kp = 32
    assert K < Kp

    # im2col: rows (pool-corner, frame), lanes (pooled-spatial, k); ones column for the bias
    xp = jnp.pad(xv, ((0, 0), (0, 0), (1, 1), (1, 1)))
    pats = jnp.stack([xp[:, :, dy:dy + Hc, dx:dx + Wc]
                      for dy in range(3) for dx in range(3)], axis=2)     # (N,Cin,9,Hc,Wc)
    pats = pats.reshape(N, K, Hc, Wc).transpose(0, 2, 3, 1)               # (N,Hc,Wc,K)
    pats = pats.reshape(N, Hp, 2, Wp, 2, K)
    ones = jnp.ones(pats.shape[:-1] + (1,), pats.dtype)
    zeros = jnp.zeros(pats.shape[:-1] + (Kp - K - 1,), pats.dtype)
    pats = jnp.concatenate([pats, ones, zeros], axis=-1)                  # (N,Hp,2,Wp,2,Kp)
    patches = pats.transpose(2, 4, 0, 1, 3, 5).reshape(4 * N, P * Kp)     # (4N, P*Kp)

    # block-diagonal conv weight, bias folded in as row K
    wc = params["conv_w"].reshape(Cout, K).T                              # (K, Cout)
    wc = jnp.concatenate([wc, params["conv_b"].reshape(1, Cout),
                          jnp.zeros((Kp - K - 1, Cout), wc.dtype)], axis=0)   # (Kp, Cout)
    w_big = jnp.kron(jnp.eye(P, dtype=wc.dtype), wc)                      # (P*Kp, P*Cout)

    # layer-0 LSTM input weights: permute rows from NCHW order (c*P+s) to the
    # kernel's natural feature order (s*Cout+c), so no activation transpose is needed.
    Hd = params["w_hh_l0"].shape[1]
    D = P * Cout
    assert D == params["w_ih_l0"].shape[1]
    j = jnp.arange(D)
    perm = (j % Cout) * P + (j // Cout)
    wih0_perm = params["w_ih_l0"].T[perm]                                 # (D, 4H)
    b0 = (params["b_ih_l0"] + params["b_hh_l0"]).reshape(1, -1)

    g0_all = conv_pool_proj(patches, w_big, wih0_perm, b0, N)             # (T*B, 4H)
    g0_seq = g0_all.reshape(T, B, 4 * Hd)                                 # free reshape

    num = numerical.reshape(B, -1)                                        # (B, 1)
    return lstm_head(
        g0_seq,
        params["w_hh_l0"].T,
        params["w_ih_l1"].T, params["w_hh_l1"].T,
        (params["b_ih_l1"] + params["b_hh_l1"]).reshape(1, -1),
        num,
        params["num_w"].T, params["num_b"].reshape(1, -1),
        params["fc1_w"][:, :Hd].T, params["fc1_w"][:, Hd:].T,
        params["fc1_b"].reshape(1, -1),
        params["fc2_w"].reshape(1, -1), params["fc2_b"].reshape(1, 1),
        hidden=Hd)


# ------------------------------------------------------------------ params / reference

def init_params(key):
    ks = jax.random.split(key, 16)

    def u(k, shape, scale):
        return jax.random.uniform(k, shape, jnp.float32, -scale, scale)

    Hd, D = 128, 512
    return {
        "conv_w": u(ks[0], (32, 3, 3, 3), 0.2),      # (out, in, kh, kw) — PyTorch layout
        "conv_b": u(ks[1], (32,), 0.2),
        "w_ih_l0": u(ks[2], (4 * Hd, D), 0.05),
        "w_hh_l0": u(ks[3], (4 * Hd, Hd), 0.05),
        "b_ih_l0": u(ks[4], (4 * Hd,), 0.05),
        "b_hh_l0": u(ks[5], (4 * Hd,), 0.05),
        "w_ih_l1": u(ks[6], (4 * Hd, Hd), 0.05),
        "w_hh_l1": u(ks[7], (4 * Hd, Hd), 0.05),
        "b_ih_l1": u(ks[8], (4 * Hd,), 0.05),
        "b_hh_l1": u(ks[9], (4 * Hd,), 0.05),
        "num_w": u(ks[10], (64, 1), 0.5),
        "num_b": u(ks[11], (64,), 0.5),
        "fc1_w": u(ks[12], (64, Hd + 64), 0.1),
        "fc1_b": u(ks[13], (64,), 0.1),
        "fc2_w": u(ks[14], (1, 64), 0.2),
        "fc2_b": u(ks[15], (1,), 0.2),
    }


def reference_forward(params, x, numerical):
    """Pure-JAX reference with identical semantics (eval mode)."""
    B, T, C, Hh, Ww = x.shape
    xv = x.reshape(B * T, Ww, Hh, C)
    y = jax.lax.conv_general_dilated(
        xv, params["conv_w"], (1, 1), "SAME",
        dimension_numbers=("NCHW", "OIHW", "NCHW")) + params["conv_b"].reshape(1, 32, 1, 1)
    y = jax.lax.reduce_window(y, -jnp.inf, jax.lax.max,
                              (1, 1, 2, 2), (1, 1, 2, 2), "VALID")
    feats = y.reshape(B, T, -1)

    Hd = 128

    def cell(xt, h, c, wih, whh, bih, bhh):
        g = xt @ wih.T + h @ whh.T + bih + bhh
        i = jax.nn.sigmoid(g[:, :Hd]); f = jax.nn.sigmoid(g[:, Hd:2 * Hd])
        gg = jnp.tanh(g[:, 2 * Hd:3 * Hd]); o = jax.nn.sigmoid(g[:, 3 * Hd:])
        c = f * c + i * gg
        return o * jnp.tanh(c), c

    h0 = c0 = h1 = c1 = jnp.zeros((B, Hd), jnp.float32)
    for t in range(T):
        h0, c0 = cell(feats[:, t], h0, c0, params["w_ih_l0"], params["w_hh_l0"],
                      params["b_ih_l0"], params["b_hh_l0"])
        h1, c1 = cell(h0, h1, c1, params["w_ih_l1"], params["w_hh_l1"],
                      params["b_ih_l1"], params["b_hh_l1"])

    num = numerical.reshape(B, -1) @ params["num_w"].T + params["num_b"]
    z = jnp.concatenate([h1, num], axis=1)
    z = jax.nn.relu(z @ params["fc1_w"].T + params["fc1_b"])
    return jax.nn.sigmoid(z @ params["fc2_w"].T + params["fc2_b"])


# ------------------------------------------------------------------ main

if __name__ == "__main__":
    key = jax.random.PRNGKey(0)
    kp, kx, kn = jax.random.split(key, 3)
    params = init_params(kp)

    # Small shapes. frame_size is scaled down to (8, 8) so lstm_input_size =
    # 32 * 4 * 4 = 512.  The module's forward does x.view(B*T, w, h, c) and
    # feeds it to a 3-in-channel conv, so the last input dim must be 3.
    B, T = 2, 4
    C, Himg, Wimg = 8, 8, 3
    x = jax.random.normal(kx, (B, T, C, Himg, Wimg), jnp.float32)
    numerical = jax.random.normal(kn, (B, 1), jnp.float32)

    out = video_lstm_forward(params, x, numerical)
    out = jax.block_until_ready(out)
    assert out.shape == (B, 1), out.shape

    ref = jax.block_until_ready(reference_forward(params, x, numerical))
    np.testing.assert_allclose(np.asarray(out), np.asarray(ref), atol=2e-3, rtol=2e-3)

    print("KERNEL_OK")
</pallas_src>

<mosaic_0001>
module attributes {stable_mosaic.version = 11 : i64} {
  func.func @conv_proj_kernel(%arg0: i32, %arg1: memref<32x512xf32, #tpu.memory_space<vmem>>, %arg2: memref<512x512xf32, #tpu.memory_space<vmem>>, %arg3: memref<512x512xf32, #tpu.memory_space<vmem>>, %arg4: memref<1x512xf32, #tpu.memory_space<vmem>>, %arg5: memref<8x512xf32, #tpu.memory_space<vmem>>) attributes {dimension_semantics = [#tpu.dimension_semantics<arbitrary>], iteration_bounds = array<i64: 1>, scalar_prefetch = 0 : i64, scratch_operands = 0 : i64, tpu.core_type = #tpu.core_type<tc>, window_params = [{pipeline_mode = #tpu.pipeline_mode<synchronous>, transform_indices = @transform_0, window_bounds = array<i64: 32, 512>}, {pipeline_mode = #tpu.pipeline_mode<synchronous>, transform_indices = @transform_1, window_bounds = array<i64: 512, 512>}, {pipeline_mode = #tpu.pipeline_mode<synchronous>, transform_indices = @transform_2, window_bounds = array<i64: 512, 512>}, {pipeline_mode = #tpu.pipeline_mode<synchronous>, transform_indices = @transform_3, window_bounds = array<i64: 1, 512>}, {pipeline_mode = #tpu.pipeline_mode<synchronous>, transform_indices = @transform_4, window_bounds = array<i64: 8, 512>}]} {
    %c0 = arith.constant 0 : index
    %c0_0 = arith.constant 0 : index
    %0 = vector.load %arg1[%c0, %c0_0] : memref<32x512xf32, #tpu.memory_space<vmem>>, vector<32x512xf32>
    %c0_1 = arith.constant 0 : index
    %c0_2 = arith.constant 0 : index
    %1 = vector.load %arg2[%c0_1, %c0_2] : memref<512x512xf32, #tpu.memory_space<vmem>>, vector<512x512xf32>
    %cst = arith.constant dense<0.000000e+00> : vector<32x512xf32>
    %2 = tpu.matmul %0, %1, %cst {dimension_numbers = #tpu.dot_dimension_numbers<[1], [0], [0], [1], [0, 0, 1, 1], [], []>} : vector<32x512xf32>, vector<512x512xf32>, vector<32x512xf32> -> vector<32x512xf32>
    %3 = vector.extract_strided_slice %2 {offsets = [0, 0], sizes = [8, 512], strides = [1, 1]} : vector<32x512xf32> to vector<8x512xf32>
    %4 = vector.extract_strided_slice %2 {offsets = [8, 0], sizes = [8, 512], strides = [1, 1]} : vector<32x512xf32> to vector<8x512xf32>
    %5 = arith.maximumf %3, %4 : vector<8x512xf32>
    %6 = vector.extract_strided_slice %2 {offsets = [16, 0], sizes = [8, 512], strides = [1, 1]} : vector<32x512xf32> to vector<8x512xf32>
    %7 = vector.extract_strided_slice %2 {offsets = [24, 0], sizes = [8, 512], strides = [1, 1]} : vector<32x512xf32> to vector<8x512xf32>
    %8 = arith.maximumf %6, %7 : vector<8x512xf32>
    %9 = arith.maximumf %5, %8 : vector<8x512xf32>
    %c0_3 = arith.constant 0 : index
    %c0_4 = arith.constant 0 : index
    %10 = vector.load %arg3[%c0_3, %c0_4] : memref<512x512xf32, #tpu.memory_space<vmem>>, vector<512x512xf32>
    %cst_5 = arith.constant dense<0.000000e+00> : vector<8x512xf32>
    %11 = tpu.matmul %9, %10, %cst_5 {dimension_numbers = #tpu.dot_dimension_numbers<[1], [0], [0], [1], [0, 0, 1, 1], [], []>} : vector<8x512xf32>, vector<512x512xf32>, vector<8x512xf32> -> vector<8x512xf32>
    %c0_6 = arith.constant 0 : index
    %c0_7 = arith.constant 0 : index
    %12 = vector.load %arg4[%c0_6, %c0_7] : memref<1x512xf32, #tpu.memory_space<vmem>>, vector<1x512xf32>
    %13 = vector.broadcast %12 : vector<1x512xf32> to vector<8x512xf32>
    %14 = arith.addf %11, %13 : vector<8x512xf32>
    %c0_8 = arith.constant 0 : index
    %c0_9 = arith.constant 0 : index
    %15 = vector.load %arg5[%c0_8, %c0_9] : memref<8x512xf32, #tpu.memory_space<vmem>>, vector<8x512xf32>
    tpu.vector_store %arg5[%c0_8, %c0_9], %14 {strides = array<i32>} : memref<8x512xf32, #tpu.memory_space<vmem>>, vector<8x512xf32>,
    return
  }
  func.func @transform_0(%arg0: i32) -> (i32, i32) {
    %c0_i32 = arith.constant 0 : i32
    %c0_i32_0 = arith.constant 0 : i32
    %c0_i32_1 = arith.constant 0 : i32
    return %c0_i32, %c0_i32_0 : i32, i32
  }
  func.func @transform_1(%arg0: i32) -> (i32, i32) {
    %c0_i32 = arith.constant 0 : i32
    %c0_i32_0 = arith.constant 0 : i32
    %c0_i32_1 = arith.constant 0 : i32
    return %c0_i32, %c0_i32_0 : i32, i32
  }
  func.func @transform_2(%arg0: i32) -> (i32, i32) {
    %c0_i32 = arith.constant 0 : i32
    %c0_i32_0 = arith.constant 0 : i32
    %c0_i32_1 = arith.constant 0 : i32
    return %c0_i32, %c0_i32_0 : i32, i32
  }
  func.func @transform_3(%arg0: i32) -> (i32, i32) {
    %c0_i32 = arith.constant 0 : i32
    %c0_i32_0 = arith.constant 0 : i32
    %c0_i32_1 = arith.constant 0 : i32
    return %c0_i32, %c0_i32_0 : i32, i32
  }
  func.func @transform_4(%arg0: i32) -> (i32, i32) {
    %c0_i32 = arith.constant 0 : i32
    %c0_i32_0 = arith.constant 0 : i32
    %c0_i32_1 = arith.constant 0 : i32
    return %c0_i32, %c0_i32_0 : i32, i32
  }
}

</mosaic_0001>

<bundles_post_ra>
// kernel: tpu_custom_call.1
= control target key start
LH: loop header
LB: loop body
LE: loop exit
PB: predicated region body
PF: predicated region fallthrough
CT: control target
= control target key end

     0   :  { %9 = vsyncpa [#allocation3], 0  ;;  %s2019_s0 = inlined_call_operand.hbm [shape: f32[32,512], index: 0, kind: input, shape index: {}]   ;;  %s2020_s1 = inlined_call_operand.hbm [shape: f32[512,512], index: 1, kind: input, shape index: {}]   ;;  %s2021_s2 = inlined_call_operand.hbm [shape: f32[512,512], index: 2, kind: input, shape index: {}]   ;;  %s2022_s3 = inlined_call_operand.vmem [shape: f32[1,512], index: 3, kind: input, shape index: {}]   ;;  %s2023_s4 = inlined_call_operand.hbm [shape: f32[8,512], index: 4, kind: output, shape index: {}]  }
   0x1   :  { %10 = vsyncpa [#allocation6], 0 }
   0x2   :  { %11 = vsyncpa [#allocation4], 0  ;;  %s1917_s15 = smov [#allocation5]   ;;  %s1918_s17 = smov [#allocation2]  }
   0x3   :  { %s29_s16 = sshll.u32 %s1917_s15, 4  ;;  %s17_s18 = sshll.u32 %s1918_s17, 4  ;;  %s30_s16 = int_to_ptr.vmem [resolvable:$true] %s29_s16  ;;  %s1948_s18 = int_to_ptr.vmem [resolvable:$true] %s17_s18 }
   0x4   :  { %s1823_s21 = scalar_lea.hbm %s2020_s1, 32768 }
   0x5   :  { %p1824_p0 = scmp.ne.s32.totalorder %s2020_s1, %s1823_s21  ;;  %p1827_p1 = scmp.lt.u32.totalorder %s1823_s21, %s2020_s1 }
   0x7   :  { %p1829_p2 = pnand %p1827_p1, %p1824_p0 }
   0x9   :  { %1832 = shalt.err (!%p1829_p2)
}
   0xa   :  { %s1833_s26 = scalar_lea.vmem %s30_s16, 32768  ;;  %p1838_p4 = scmp.lt.s32.totalorder %s30_s16, %s30_s16 }
   0xb   :  { %p1834_p3 = scmp.ne.s32.totalorder %s30_s16, %s1833_s26  ;;  %p1839_p5 = scmp.lt.s32.totalorder %s1833_s26, %s1833_s26 }
   0xd   :  { %p1840_p6 = por %p1839_p5, %p1838_p4 }
   0xf   :  { %p1841_p7 = pnand %p1840_p6, %p1834_p3 }
  0x11   :  { %1844 = shalt.err (!%p1841_p7)
}
  0x12   :  { %s1919_s27 = smov 512   ;;  %s1920_s28 = smov 32  }
  0x13   :  { %35 = dma.hbm_to_vmem [thread:$0]  %s2020_s1, 32768, %s30_s16, [#allocation6], %s1919_s27, %s1919_s27, %s1920_s28  }
  0x14   :  { %s1845_s7 = scalar_lea.hbm %s2019_s0, 2048 }
  0x15   :  { %p1846_p8 = scmp.ne.s32.totalorder %s2019_s0, %s1845_s7  ;;  %p1849_p9 = scmp.lt.u32.totalorder %s1845_s7, %s2019_s0 }
  0x17   :  { %p1851_p10 = pnand %p1849_p9, %p1846_p8 }
  0x19   :  { %1854 = shalt.err (!%p1851_p10)
}
  0x1a   :  { %s1855_s12 = scalar_lea.vmem %s1948_s18, 2048  ;;  %p1860_p12 = scmp.lt.s32.totalorder %s1948_s18, %s1948_s18 }
  0x1b   :  { %p1856_p11 = scmp.ne.s32.totalorder %s1948_s18, %s1855_s12  ;;  %p1861_p13 = scmp.lt.s32.totalorder %s1855_s12, %s1855_s12 }
  0x1d   :  { %p1862_p0 = por %p1861_p13, %p1860_p12 }
  0x1f   :  { %p1863_p1 = pnand %p1862_p0, %p1856_p11 }
  0x21   :  { %1866 = shalt.err (!%p1863_p1)
}
  0x22   :  { %23 = dma.hbm_to_vmem [thread:$0]  %s2019_s0, 2048, %s1948_s18, [#allocation3], %s1919_s27, %s1919_s27, %s1920_s28  }
  0x23   :  { %s1921_s14 = smov [#allocation7]   ;;  %s1867_s19 = scalar_lea.hbm %s2021_s2, 32768 }
  0x24   :  { %s41_s15 = sshll.u32 %s1921_s14, 4  ;;  %p1868_p2 = scmp.ne.s32.totalorder %s2021_s2, %s1867_s19  ;;  %s42_s15 = int_to_ptr.vmem [resolvable:$true] %s41_s15 }
  0x25   :  { %p1871_p3 = scmp.lt.u32.totalorder %s1867_s19, %s2021_s2 }
  0x27   :  { %p1873_p4 = pnand %p1871_p3, %p1868_p2 }
  0x29   :  { %1876 = shalt.err (!%p1873_p4)
}
  0x2a   :  { %s1877_s24 = scalar_lea.vmem %s42_s15, 32768  ;;  %p1882_p6 = scmp.lt.s32.totalorder %s42_s15, %s42_s15 }
  0x2b   :  { %p1878_p5 = scmp.ne.s32.totalorder %s42_s15, %s1877_s24  ;;  %p1883_p7 = scmp.lt.s32.totalorder %s1877_s24, %s1877_s24 }
  0x2d   :  { %p1884_p8 = por %p1883_p7, %p1882_p6 }
  0x2f   :  { %p1885_p9 = pnand %p1884_p8, %p1878_p5 }
  0x31   :  { %1888 = shalt.err (!%p1885_p9)
}
  0x32   :  { %47 = dma.hbm_to_vmem [thread:$0]  %s2021_s2, 32768, %s42_s15, [#allocation6], %s1919_s27, %s1919_s27, %s1920_s28  }
  0x33   :  { %1911 = dma.done.wait [#allocation3], 2048  }
  0x34   :  { %1912 = vsyncadd [#allocation3], 4294965248 }
  0x35   :  { %1913 = dma.done.wait [#allocation6], 65536  }
  0x36   :  { %1914 = vsyncadd [#allocation6], 4294901760  ;;  %v76_v0 = vld [vmem:[#allocation5 + $0x8] sm:$0xff]  ;;  %v78_v2 = vld [vmem:[#allocation5 + $0x18] sm:$0xff]  ;;  %s1922_s26 = smov [#allocation8]  }
  0x37   :  { %v80_v1 = vld [vmem:[#allocation5 + $0x28] sm:$0xff]  ;;  %v82_v4 = vld [vmem:[#allocation5 + $0x38] sm:$0xff]  ;;  %v75_v5 = vld [vmem:[#allocation5] sm:$0xff]  ;;  %s1271_s27 = sshll.u32 %s1922_s26, 4  ;;  %s1272_s27 = int_to_ptr.vmem [resolvable:$true] %s1271_s27 }
  0x38   :  { %v1281_v3 = vpack.c.bf16 %v80_v1, %v76_v0  ;;  %v79_v6 = vld [vmem:[#allocation5 + $0x20] sm:$0xff]  ;;  %v1409_v7 = vpack.c.bf16 %v82_v4, %v78_v2  ;;  %v77_v9 = vld [vmem:[#allocation5 + $0x10] sm:$0xff]  ;;  %v84_v11 = vld [vmem:[#allocation5 + $0x48] sm:$0xff]  ;;  %p1894_p11 = scmp.lt.s32.totalorder %s1272_s27, %s1272_s27 }
  0x39   :  { %v1283_v8 = vpack.c.bf16 %v79_v6, %v75_v5  ;;  %v81_v10 = vld [vmem:[#allocation5 + $0x30] sm:$0xff]  ;;  %v88_v13 = vld [vmem:[#allocation5 + $0x68] sm:$0xff]  ;;  %v86_v14 = vld [vmem:[#allocation5 + $0x58] sm:$0xff] }
  0x3a   :  { %1282 = vmatprep.subr.bf16.mxu0 %v1281_v3  ;;  %v1411_v12 = vpack.c.bf16 %v81_v10, %v77_v9  ;;  %v90_v15 = vld [vmem:[#allocation5 + $0x78] sm:$0xff]  ;;  %1410 = vmatprep.subr.bf16.mxu1 %v1409_v7  ;;  %v1285_v16 = vpack.c.bf16 %v88_v13, %v84_v11  ;;  %v83_v18 = vld [vmem:[#allocation5 + $0x40] sm:$0xff]  ;;  %v85_v20 = vld [vmem:[#allocation5 + $0x50] sm:$0xff] }
  0x3b   :  { %1284 = vmatpush1.bf16.msra.mxu0 %v1283_v8  ;;  %v1413_v17 = vpack.c.bf16 %v90_v15, %v86_v14  ;;  %v87_v19 = vld [vmem:[#allocation5 + $0x60] sm:$0xff]  ;;  %v89_v22 = vld [vmem:[#allocation5 + $0x70] sm:$0xff]  ;;  %v92_v23 = vld [vmem:[#allocation5 + $0x88] sm:$0xff] }
  0x3c   :  { %1412 = vmatpush1.bf16.msra.mxu1 %v1411_v12  ;;  %v1287_v21 = vpack.c.bf16 %v87_v19, %v83_v18  ;;  %v96_v24 = vld [vmem:[#allocation5 + $0xa8] sm:$0xff]  ;;  %1286 = vmatprep.subr.bf16.mxu0 %v1285_v16  ;;  %v1415_v25 = vpack.c.bf16 %v89_v22, %v85_v20  ;;  %v94_v27 = vld [vmem:[#allocation5 + $0x98] sm:$0xff]  ;;  %v91_v29 = vld [vmem:[#allocation5 + $0x80] sm:$0xff] }
  0x3d   :  { %1414 = vmatprep.subr.bf16.mxu1 %v1413_v17  ;;  %v1289_v26 = vpack.c.bf16 %v96_v24, %v92_v23  ;;  %v98_v28 = vld [vmem:[#allocation5 + $0xb8] sm:$0xff]  ;;  %v95_v31 = vld [vmem:[#allocation5 + $0xa0] sm:$0xff]  ;;  %v93_v32 = vld [vmem:[#allocation5 + $0x90] sm:$0xff] }
  0x3e   :  { %v1417_v30 = vpack.c.bf16 %v98_v28, %v94_v27  ;;  %v97_v33 = vld [vmem:[#allocation5 + $0xb0] sm:$0xff]  ;;  %v1291_v34 = vpack.c.bf16 %v95_v31, %v91_v29  ;;  %v100_v35 = vld [vmem:[#allocation5 + $0xc8] sm:$0xff]  ;;  %v102_v37 = vld [vmem:[#allocation5 + $0xd8] sm:$0xff] }
  0x3f   :  { %1288 = vmatpush1.bf16.msra.mxu0 %v1287_v21  ;;  %v104_v36 = vld [vmem:[#allocation5 + $0xe8] sm:$0xff]  ;;  %v1419_v38 = vpack.c.bf16 %v97_v33, %v93_v32  ;;  %v106_v40 = vld [vmem:[#allocation5 + $0xf8] sm:$0xff]  ;;  %v99_v41 = vld [vmem:[#allocation5 + $0xc0] sm:$0xff] }
  0x40   :  { %1416 = vmatpush1.bf16.msra.mxu1 %v1415_v25  ;;  %1290 = vmatprep.subr.bf16.mxu0 %v1289_v26  ;;  %v1293_v39 = vpack.c.bf16 %v104_v36, %v100_v35  ;;  %v103_v42 = vld [vmem:[#allocation5 + $0xe0] sm:$0xff]  ;;  %v1421_v43 = vpack.c.bf16 %v106_v40, %v102_v37  ;;  %v101_v44 = vld [vmem:[#allocation5 + $0xd0] sm:$0xff]  ;;  %v108_v46 = vld [vmem:[#allocation5 + $0x108] sm:$0xff] }
  0x41   :  { %1418 = vmatprep.subr.bf16.mxu1 %v1417_v30  ;;  %v105_v45 = vld [vmem:[#allocation5 + $0xf0] sm:$0xff]  ;;  %v112_v47 = vld [vmem:[#allocation5 + $0x128] sm:$0xff]  ;;  %v110_v48 = vld [vmem:[#allocation5 + $0x118] sm:$0xff]  ;;  %v1295_v50 = vpack.c.bf16 %v103_v42, %v99_v41 }
  0x42   :  { %v114_v49 = vld [vmem:[#allocation5 + $0x138] sm:$0xff]  ;;  %v1423_v51 = vpack.c.bf16 %v105_v45, %v101_v44  ;;  %v1297_v52 = vpack.c.bf16 %v112_v47, %v108_v46  ;;  %v107_v53 = vld [vmem:[#allocation5 + $0x100] sm:$0xff]  ;;  %v109_v55 = vld [vmem:[#allocation5 + $0x110] sm:$0xff] }
  0x43   :  { %1292 = vmatpush1.bf16.msra.mxu0 %v1291_v34  ;;  %v111_v54 = vld [vmem:[#allocation5 + $0x120] sm:$0xff]  ;;  %v1425_v56 = vpack.c.bf16 %v114_v49, %v110_v48  ;;  %v113_v57 = vld [vmem:[#allocation5 + $0x130] sm:$0xff]  ;;  %v116_v58 = vld [vmem:[#allocation5 + $0x148] sm:$0xff] }
  0x44   :  { %1420 = vmatpush1.bf16.msra.mxu1 %v1419_v38  ;;  %1294 = vmatprep.subr.bf16.mxu0 %v1293_v39  ;;  %v120_v59 = vld [vmem:[#allocation5 + $0x168] sm:$0xff]  ;;  %v118_v60 = vld [vmem:[#allocation5 + $0x158] sm:$0xff]  ;;  %v1299_v62 = vpack.c.bf16 %v111_v54, %v107_v53  ;;  %v1427_v63 = vpack.c.bf16 %v113_v57, %v109_v55  ;;  %v115_v1 = vld [vmem:[#allocation5 + $0x140] sm:$0xff] }
  0x45   :  { %1422 = vmatprep.subr.bf16.mxu1 %v1421_v43  ;;  %v122_v61 = vld [vmem:[#allocation5 + $0x178] sm:$0xff]  ;;  %v1301_v0 = vpack.c.bf16 %v120_v59, %v116_v58  ;;  %v119_v2 = vld [vmem:[#allocation5 + $0x160] sm:$0xff]  ;;  %v117_v3 = vld [vmem:[#allocation5 + $0x150] sm:$0xff] }
  0x46   :  { %v1429_v4 = vpack.c.bf16 %v122_v61, %v118_v60  ;;  %v121_v5 = vld [vmem:[#allocation5 + $0x170] sm:$0xff]  ;;  %v124_v6 = vld [vmem:[#allocation5 + $0x188] sm:$0xff]  ;;  %v126_v8 = vld [vmem:[#allocation5 + $0x198] sm:$0xff]  ;;  %v1303_v10 = vpack.c.bf16 %v119_v2, %v115_v1 }
  0x47   :  { %1296 = vmatpush1.bf16.msra.mxu0 %v1295_v50  ;;  %v128_v7 = vld [vmem:[#allocation5 + $0x1a8] sm:$0xff]  ;;  %v130_v9 = vld [vmem:[#allocation5 + $0x1b8] sm:$0xff]  ;;  %v1431_v11 = vpack.c.bf16 %v121_v5, %v117_v3  ;;  %v123_v13 = vld [vmem:[#allocation5 + $0x180] sm:$0xff] }
  0x48   :  { %1424 = vmatpush1.bf16.msra.mxu1 %v1423_v51  ;;  %1298 = vmatprep.subr.bf16.mxu0 %v1297_v52  ;;  %v1305_v12 = vpack.c.bf16 %v128_v7, %v124_v6  ;;  %v127_v14 = vld [vmem:[#allocation5 + $0x1a0] sm:$0xff]  ;;  %v125_v15 = vld [vmem:[#allocation5 + $0x190] sm:$0xff]  ;;  %v1433_v16 = vpack.c.bf16 %v130_v9, %v126_v8  ;;  %v132_v18 = vld [vmem:[#allocation5 + $0x1c8] sm:$0xff] }
  0x49   :  { %1426 = vmatprep.subr.bf16.mxu1 %v1425_v56  ;;  %v129_v17 = vld [vmem:[#allocation5 + $0x1b0] sm:$0xff]  ;;  %v136_v19 = vld [vmem:[#allocation5 + $0x1e8] sm:$0xff]  ;;  %v134_v20 = vld [vmem:[#allocation5 + $0x1d8] sm:$0xff]  ;;  %v1307_v22 = vpack.c.bf16 %v127_v14, %v123_v13 }
  0x4a   :  { %v138_v21 = vld [vmem:[#allocation5 + $0x1f8] sm:$0xff]  ;;  %v1435_v23 = vpack.c.bf16 %v129_v17, %v125_v15  ;;  %v1309_v24 = vpack.c.bf16 %v136_v19, %v132_v18  ;;  %v131_v25 = vld [vmem:[#allocation5 + $0x1c0] sm:$0xff]  ;;  %v133_v27 = vld [vmem:[#allocation5 + $0x1d0] sm:$0xff] }
  0x4b   :  { %1300 = vmatpush1.bf16.msra.mxu0 %v1299_v62  ;;  %v135_v26 = vld [vmem:[#allocation5 + $0x1e0] sm:$0xff]  ;;  %v1437_v28 = vpack.c.bf16 %v138_v21, %v134_v20  ;;  %v137_v29 = vld [vmem:[#allocation5 + $0x1f0] sm:$0xff]  ;;  %v140_v30 = vld [vmem:[#allocation5 + $0x208] sm:$0xff] }
  0x4c   :  { %1428 = vmatpush1.bf16.msra.mxu1 %v1427_v63  ;;  %1302 = vmatprep.subr.bf16.mxu0 %v1301_v0  ;;  %v144_v31 = vld [vmem:[#allocation5 + $0x228] sm:$0xff]  ;;  %v142_v32 = vld [vmem:[#allocation5 + $0x218] sm:$0xff]  ;;  %v1311_v34 = vpack.c.bf16 %v135_v26, %v131_v25  ;;  %v1439_v35 = vpack.c.bf16 %v137_v29, %v133_v27  ;;  %v139_v37 = vld [vmem:[#allocation5 + $0x200] sm:$0xff] }
  0x4d   :  { %1430 = vmatprep.subr.bf16.mxu1 %v1429_v4  ;;  %v146_v33 = vld [vmem:[#allocation5 + $0x238] sm:$0xff]  ;;  %v1313_v36 = vpack.c.bf16 %v144_v31, %v140_v30  ;;  %v143_v38 = vld [vmem:[#allocation5 + $0x220] sm:$0xff]  ;;  %v141_v39 = vld [vmem:[#allocation5 + $0x210] sm:$0xff] }
  0x4e   :  { %v1441_v40 = vpack.c.bf16 %v146_v33, %v142_v32  ;;  %v145_v41 = vld [vmem:[#allocation5 + $0x230] sm:$0xff]  ;;  %v148_v42 = vld [vmem:[#allocation5 + $0x248] sm:$0xff]  ;;  %v150_v44 = vld [vmem:[#allocation5 + $0x258] sm:$0xff]  ;;  %v1315_v46 = vpack.c.bf16 %v143_v38, %v139_v37 }
  0x4f   :  { %1304 = vmatpush1.bf16.msra.mxu0 %v1303_v10  ;;  %v152_v43 = vld [vmem:[#allocation5 + $0x268] sm:$0xff]  ;;  %v154_v45 = vld [vmem:[#allocation5 + $0x278] sm:$0xff]  ;;  %v1443_v47 = vpack.c.bf16 %v145_v41, %v141_v39  ;;  %v147_v49 = vld [vmem:[#allocation5 + $0x240] sm:$0xff] }
  0x50   :  { %1432 = vmatpush1.bf16.msra.mxu1 %v1431_v11  ;;  %1306 = vmatprep.subr.bf16.mxu0 %v1305_v12  ;;  %v1317_v48 = vpack.c.bf16 %v152_v43, %v148_v42  ;;  %v151_v50 = vld [vmem:[#allocation5 + $0x260] sm:$0xff]  ;;  %v149_v51 = vld [vmem:[#allocation5 + $0x250] sm:$0xff]  ;;  %v1445_v52 = vpack.c.bf16 %v154_v45, %v150_v44  ;;  %v156_v54 = vld [vmem:[#allocation5 + $0x288] sm:$0xff] }
  0x51   :  { %1434 = vmatprep.subr.bf16.mxu1 %v1433_v16  ;;  %v153_v53 = vld [vmem:[#allocation5 + $0x270] sm:$0xff]  ;;  %v160_v55 = vld [vmem:[#allocation5 + $0x2a8] sm:$0xff]  ;;  %v158_v56 = vld [vmem:[#allocation5 + $0x298] sm:$0xff]  ;;  %v1319_v58 = vpack.c.bf16 %v151_v50, %v147_v49 }
  0x52   :  { %v162_v57 = vld [vmem:[#allocation5 + $0x2b8] sm:$0xff]  ;;  %v1447_v59 = vpack.c.bf16 %v153_v53, %v149_v51  ;;  %v1321_v60 = vpack.c.bf16 %v160_v55, %v156_v54  ;;  %v155_v61 = vld [vmem:[#allocation5 + $0x280] sm:$0xff]  ;;  %v157_v63 = vld [vmem:[#allocation5 + $0x290] sm:$0xff] }
  0x53   :  { %1308 = vmatpush1.bf16.msra.mxu0 %v1307_v22  ;;  %v159_v62 = vld [vmem:[#allocation5 + $0x2a0] sm:$0xff]  ;;  %v1449_v0 = vpack.c.bf16 %v162_v57, %v158_v56  ;;  %v161_v1 = vld [vmem:[#allocation5 + $0x2b0] sm:$0xff]  ;;  %v164_v2 = vld [vmem:[#allocation5 + $0x2c8] sm:$0xff] }
  0x54   :  { %1436 = vmatpush1.bf16.msra.mxu1 %v1435_v23  ;;  %1310 = vmatprep.subr.bf16.mxu0 %v1309_v24  ;;  %v168_v3 = vld [vmem:[#allocation5 + $0x2e8] sm:$0xff]  ;;  %v166_v4 = vld [vmem:[#allocation5 + $0x2d8] sm:$0xff]  ;;  %v1323_v6 = vpack.c.bf16 %v159_v62, %v155_v61  ;;  %v163_v7 = vld [vmem:[#allocation5 + $0x2c0] sm:$0xff]  ;;  %v1451_v8 = vpack.c.bf16 %v161_v1, %v157_v63 }
  0x55   :  { %1438 = vmatprep.subr.bf16.mxu1 %v1437_v28  ;;  %v170_v5 = vld [vmem:[#allocation5 + $0x2f8] sm:$0xff]  ;;  %v1325_v9 = vpack.c.bf16 %v168_v3, %v164_v2  ;;  %v167_v10 = vld [vmem:[#allocation5 + $0x2e0] sm:$0xff]  ;;  %v165_v11 = vld [vmem:[#allocation5 + $0x2d0] sm:$0xff] }
  0x56   :  { %v169_v12 = vld [vmem:[#allocation5 + $0x2f0] sm:$0xff]  ;;  %v1453_v13 = vpack.c.bf16 %v170_v5, %v166_v4  ;;  %v172_v14 = vld [vmem:[#allocation5 + $0x308] sm:$0xff]  ;;  %v174_v17 = vld [vmem:[#allocation5 + $0x318] sm:$0xff]  ;;  %v1327_v19 = vpack.c.bf16 %v167_v10, %v163_v7 }
  0x57   :  { %1312 = vmatpush1.bf16.msra.mxu0 %v1311_v34  ;;  %v176_v15 = vld [vmem:[#allocation5 + $0x328] sm:$0xff]  ;;  %v178_v18 = vld [vmem:[#allocation5 + $0x338] sm:$0xff]  ;;  %v1455_v20 = vpack.c.bf16 %v169_v12, %v165_v11  ;;  %v171_v22 = vld [vmem:[#allocation5 + $0x300] sm:$0xff] }
  0x58   :  { %1440 = vmatpush1.bf16.msra.mxu1 %v1439_v35  ;;  %1314 = vmatprep.subr.bf16.mxu0 %v1313_v36  ;;  %v60_v16 = vld [vmem:[#allocation2 + $0x8] sm:$0xff]  ;;  %v1329_v21 = vpack.c.bf16 %v176_v15, %v172_v14  ;;  %v175_v23 = vld [vmem:[#allocation5 + $0x320] sm:$0xff]  ;;  %v173_v24 = vld [vmem:[#allocation5 + $0x310] sm:$0xff]  ;;  %v1457_v25 = vpack.c.bf16 %v178_v18, %v174_v17 }
  0x59   :  { %1442 = vmatprep.subr.bf16.mxu1 %v1441_v40  ;;  %395 = vmatprep.mubr.f32.mxu0 %v60_v16  ;;  %v177_v26 = vld [vmem:[#allocation5 + $0x330] sm:$0xff]  ;;  %v180_v27 = vld [vmem:[#allocation5 + $0x348] sm:$0xff]  ;;  %v182_v29 = vld [vmem:[#allocation5 + $0x358] sm:$0xff]  ;;  %v1331_v31 = vpack.c.bf16 %v175_v23, %v171_v22 }
  0x5a   :  { %573 = vmatprep.mubr.f32.mxu1 %v60_v16  ;;  %v184_v28 = vld [vmem:[#allocation5 + $0x368] sm:$0xff]  ;;  %v186_v30 = vld [vmem:[#allocation5 + $0x378] sm:$0xff]  ;;  %v1459_v32 = vpack.c.bf16 %v177_v26, %v173_v24  ;;  %v179_v34 = vld [vmem:[#allocation5 + $0x340] sm:$0xff] }
  0x5b   :  { %1316 = vmatpush1.bf16.msra.mxu0 %v1315_v46  ;;  %v1333_v33 = vpack.c.bf16 %v184_v28, %v180_v27  ;;  %v183_v35 = vld [vmem:[#allocation5 + $0x360] sm:$0xff]  ;;  %v181_v36 = vld [vmem:[#allocation5 + $0x350] sm:$0xff]  ;;  %v1461_v37 = vpack.c.bf16 %v186_v30, %v182_v29  ;;  %v188_v39 = vld [vmem:[#allocation5 + $0x388] sm:$0xff] }
  0x5c   :  { %1444 = vmatpush1.bf16.msra.mxu1 %v1443_v47  ;;  %1318 = vmatprep.subr.bf16.mxu0 %v1317_v48  ;;  %v185_v38 = vld [vmem:[#allocation5 + $0x370] sm:$0xff]  ;;  %v192_v40 = vld [vmem:[#allocation5 + $0x3a8] sm:$0xff]  ;;  %v190_v41 = vld [vmem:[#allocation5 + $0x398] sm:$0xff]  ;;  %v1335_v43 = vpack.c.bf16 %v183_v35, %v179_v34 }
  0x5d   :  { %1446 = vmatprep.subr.bf16.mxu1 %v1445_v52  ;;  %v194_v42 = vld [vmem:[#allocation5 + $0x3b8] sm:$0xff]  ;;  %v1463_v44 = vpack.c.bf16 %v185_v38, %v181_v36  ;;  %v1337_v45 = vpack.c.bf16 %v192_v40, %v188_v39  ;;  %v187_v46 = vld [vmem:[#allocation5 + $0x380] sm:$0xff]  ;;  %v189_v48 = vld [vmem:[#allocation5 + $0x390] sm:$0xff] }
  0x5e   :  { %v191_v47 = vld [vmem:[#allocation5 + $0x3a0] sm:$0xff]  ;;  %v1465_v49 = vpack.c.bf16 %v194_v42, %v190_v41  ;;  %v193_v50 = vld [vmem:[#allocation5 + $0x3b0] sm:$0xff]  ;;  %v196_v51 = vld [vmem:[#allocation5 + $0x3c8] sm:$0xff] }
  0x5f   :  { %1320 = vmatpush1.bf16.msra.mxu0 %v1319_v58  ;;  %v200_v52 = vld [vmem:[#allocation5 + $0x3e8] sm:$0xff]  ;;  %v198_v53 = vld [vmem:[#allocation5 + $0x3d8] sm:$0xff]  ;;  %v1339_v55 = vpack.c.bf16 %v191_v47, %v187_v46  ;;  %v1467_v56 = vpack.c.bf16 %v193_v50, %v189_v48  ;;  %v195_v58 = vld [vmem:[#allocation5 + $0x3c0] sm:$0xff] }
  0x60   :  { %1448 = vmatpush1.bf16.msra.mxu1 %v1447_v59  ;;  %1322 = vmatprep.subr.bf16.mxu0 %v1321_v60  ;;  %v202_v54 = vld [vmem:[#allocation5 + $0x3f8] sm:$0xff]  ;;  %v1341_v57 = vpack.c.bf16 %v200_v52, %v196_v51  ;;  %v199_v59 = vld [vmem:[#allocation5 + $0x3e0] sm:$0xff]  ;;  %v197_v60 = vld [vmem:[#allocation5 + $0x3d0] sm:$0xff] }
  0x61   :  { %1450 = vmatprep.subr.bf16.mxu1 %v1449_v0  ;;  %v1469_v61 = vpack.c.bf16 %v202_v54, %v198_v53  ;;  %v201_v62 = vld [vmem:[#allocation5 + $0x3f0] sm:$0xff]  ;;  %v204_v63 = vld [vmem:[#allocation5 + $0x408] sm:$0xff]  ;;  %v206_v1 = vld [vmem:[#allocation5 + $0x418] sm:$0xff]  ;;  %v1343_v3 = vpack.c.bf16 %v199_v59, %v195_v58 }
  0x62   :  { %v208_v0 = vld [vmem:[#allocation5 + $0x428] sm:$0xff]  ;;  %v210_v2 = vld [vmem:[#allocation5 + $0x438] sm:$0xff]  ;;  %v1471_v4 = vpack.c.bf16 %v201_v62, %v197_v60  ;;  %v207_v7 = vld [vmem:[#allocation5 + $0x420] sm:$0xff] }
  0x63   :  { %1324 = vmatpush1.bf16.msra.mxu0 %v1323_v6  ;;  %v1345_v5 = vpack.c.bf16 %v208_v0, %v204_v63  ;;  %v203_v6 = vld [vmem:[#allocation5 + $0x400] sm:$0xff]  ;;  %v209_v10 = vld [vmem:[#allocation5 + $0x430] sm:$0xff]  ;;  %v212_v11 = vld [vmem:[#allocation5 + $0x448] sm:$0xff] }
  0x64   :  { %1452 = vmatpush1.bf16.msra.mxu1 %v1451_v8  ;;  %1326 = vmatprep.subr.bf16.mxu0 %v1325_v9  ;;  %v205_v8 = vld [vmem:[#allocation5 + $0x410] sm:$0xff]  ;;  %v1473_v9 = vpack.c.bf16 %v210_v2, %v206_v1  ;;  %v216_v12 = vld [vmem:[#allocation5 + $0x468] sm:$0xff]  ;;  %v218_v14 = vld [vmem:[#allocation5 + $0x478] sm:$0xff]  ;;  %v1347_v16 = vpack.c.bf16 %v207_v7, %v203_v6 }
  0x65   :  { %1454 = vmatprep.subr.bf16.mxu1 %v1453_v13  ;;  %v214_v13 = vld [vmem:[#allocation5 + $0x458] sm:$0xff]  ;;  %v59_v15 = vld [vmem:[#allocation2] sm:$0xff]  ;;  %v1475_v17 = vpack.c.bf16 %v209_v10, %v205_v8  ;;  %v1349_v18 = vpack.c.bf16 %v216_v12, %v212_v11  ;;  %v217_v23 = vld [vmem:[#allocation5 + $0x470] sm:$0xff] }
  0x66   :  { %v1477_v22 = vpack.c.bf16 %v218_v14, %v214_v13  ;;  %v220_v24 = vld [vmem:[#allocation5 + $0x488] sm:$0xff]  ;;  %v222_v26 = vld [vmem:[#allocation5 + $0x498] sm:$0xff]  ;;  %v225_v35 = vld [vmem:[#allocation5 + $0x4b0] sm:$0xff] }
  0x67   :  { %1328 = vmatpush1.bf16.msra.mxu0 %v1327_v19  ;;  %v211_v19 = vld [vmem:[#allocation5 + $0x440] sm:$0xff]  ;;  %v226_v27 = vld [vmem:[#allocation5 + $0x4b8] sm:$0xff]  ;;  %v228_v36 = vld [vmem:[#allocation5 + $0x4c8] sm:$0xff] }
  0x68   :  { %1456 = vmatpush1.bf16.msra.mxu1 %v1455_v20  ;;  %1330 = vmatprep.subr.bf16.mxu0 %v1329_v21  ;;  %v215_v20 = vld [vmem:[#allocation5 + $0x460] sm:$0xff]  ;;  %v213_v21 = vld [vmem:[#allocation5 + $0x450] sm:$0xff]  ;;  %v1481_v34 = vpack.c.bf16 %v226_v27, %v222_v26  ;;  %v230_v38 = vld [vmem:[#allocation5 + $0x4d8] sm:$0xff] }
  0x69   :  { %1458 = vmatprep.subr.bf16.mxu1 %v1457_v25  ;;  %v224_v25 = vld [vmem:[#allocation5 + $0x4a8] sm:$0xff]  ;;  %v1351_v28 = vpack.c.bf16 %v215_v20, %v211_v19  ;;  %v1479_v29 = vpack.c.bf16 %v217_v23, %v213_v21  ;;  %v234_v39 = vld [vmem:[#allocation5 + $0x4f8] sm:$0xff]  ;;  %v233_v47 = vld [vmem:[#allocation5 + $0x4f0] sm:$0xff] }
  0x6a   :  { %v1353_v30 = vpack.c.bf16 %v224_v25, %v220_v24  ;;  %v1485_v46 = vpack.c.bf16 %v234_v39, %v230_v38  ;;  %v236_v48 = vld [vmem:[#allocation5 + $0x508] sm:$0xff]  ;;  %v238_v50 = vld [vmem:[#allocation5 + $0x518] sm:$0xff]  ;;  %v235_v53 = vld [vmem:[#allocation5 + $0x500] sm:$0xff] }
  0x6b   :  { %1332 = vmatpush1.bf16.msra.mxu0 %v1331_v31  ;;  %v219_v31 = vld [vmem:[#allocation5 + $0x480] sm:$0xff]  ;;  %v242_v51 = vld [vmem:[#allocation5 + $0x538] sm:$0xff]  ;;  %v241_v58 = vld [vmem:[#allocation5 + $0x530] sm:$0xff] }
  0x6c   :  { %1460 = vmatpush1.bf16.msra.mxu1 %v1459_v32  ;;  %1334 = vmatprep.subr.bf16.mxu0 %v1333_v33  ;;  %v223_v32 = vld [vmem:[#allocation5 + $0x4a0] sm:$0xff]  ;;  %v221_v33 = vld [vmem:[#allocation5 + $0x490] sm:$0xff]  ;;  %v244_v59 = vld [vmem:[#allocation5 + $0x548] sm:$0xff]  ;;  %v1489_v60 = vpack.c.bf16 %v242_v51, %v238_v50 }
  0x6d   :  { %1462 = vmatprep.subr.bf16.mxu1 %v1461_v37  ;;  %v232_v37 = vld [vmem:[#allocation5 + $0x4e8] sm:$0xff]  ;;  %v1355_v40 = vpack.c.bf16 %v223_v32, %v219_v31  ;;  %v1483_v41 = vpack.c.bf16 %v225_v35, %v221_v33  ;;  %v239_v54 = vld [vmem:[#allocation5 + $0x520] sm:$0xff]  ;;  %v246_v0 = vld [vmem:[#allocation5 + $0x558] sm:$0xff] }
  0x6e   :  { %v1357_v42 = vpack.c.bf16 %v232_v37, %v228_v36  ;;  %v64_v62 = vld [vmem:[#allocation2 + $0x28] sm:$0xff]  ;;  %v63_v63 = vld [vmem:[#allocation2 + $0x20] sm:$0xff]  ;;  %v250_v1 = vld [vmem:[#allocation5 + $0x578] sm:$0xff]  ;;  %v1363_v2 = vpack.c.bf16 %v239_v54, %v235_v53 }
  0x6f   :  { %1336 = vmatpush1.bf16.msra.mxu0 %v1335_v43  ;;  %v227_v43 = vld [vmem:[#allocation5 + $0x4c0] sm:$0xff]  ;;  %v245_v7 = vld [vmem:[#allocation5 + $0x550] sm:$0xff]  ;;  %v68_v8 = vld [vmem:[#allocation2 + $0x48] sm:$0xff]  ;;  %v1493_v10 = vpack.c.bf16 %v250_v1, %v246_v0 }
  0x70   :  { %1464 = vmatpush1.bf16.msra.mxu1 %v1463_v44  ;;  %1338 = vmatprep.subr.bf16.mxu0 %v1337_v45  ;;  %v231_v44 = vld [vmem:[#allocation5 + $0x4e0] sm:$0xff]  ;;  %v229_v45 = vld [vmem:[#allocation5 + $0x4d0] sm:$0xff]  ;;  %v252_v12 = vld [vmem:[#allocation5 + $0x588] sm:$0xff] }
  0x71   :  { %1466 = vmatprep.subr.bf16.mxu1 %v1465_v49  ;;  %v240_v49 = vld [vmem:[#allocation5 + $0x528] sm:$0xff]  ;;  %v1359_v52 = vpack.c.bf16 %v231_v44, %v227_v43  ;;  %v249_v11 = vld [vmem:[#allocation5 + $0x570] sm:$0xff]  ;;  %v254_v14 = vld [vmem:[#allocation5 + $0x598] sm:$0xff] }
  0x72   :  { %v256_v13 = vld [vmem:[#allocation5 + $0x5a8] sm:$0xff]  ;;  %v1495_v19 = vpack.c.bf16 %v249_v11, %v245_v7  ;;  %v255_v21 = vld [vmem:[#allocation5 + $0x5a0] sm:$0xff]  ;;  %v257_v25 = vld [vmem:[#allocation5 + $0x5b0] sm:$0xff] }
  0x73   :  { %1340 = vmatpush1.bf16.msra.mxu0 %v1339_v55  ;;  %v1487_v55 = vpack.c.bf16 %v233_v47, %v229_v45  ;;  %v1369_v20 = vpack.c.bf16 %v256_v13, %v252_v12  ;;  %v71_v23 = vld [vmem:[#allocation2 + $0x60] sm:$0xff]  ;;  %v260_v26 = vld [vmem:[#allocation5 + $0x5c8] sm:$0xff]  ;;  %v62_v31 = vld [vmem:[#allocation2 + $0x18] sm:$0xff] }
  0x74   :  { %1468 = vmatpush1.bf16.msra.mxu1 %v1467_v56  ;;  %1342 = vmatprep.subr.bf16.mxu0 %v1341_v57  ;;  %v1361_v56 = vpack.c.bf16 %v240_v49, %v236_v48  ;;  %v237_v57 = vld [vmem:[#allocation5 + $0x510] sm:$0xff]  ;;  %v264_v27 = vld [vmem:[#allocation5 + $0x5e8] sm:$0xff]  ;;  %v263_v35 = vld [vmem:[#allocation5 + $0x5e0] sm:$0xff] }
  0x75   :  { %1470 = vmatprep.subr.bf16.mxu1 %v1469_v61  ;;  %v248_v61 = vld [vmem:[#allocation5 + $0x568] sm:$0xff]  ;;  %v1373_v33 = vpack.c.bf16 %v264_v27, %v260_v26  ;;  %v261_v36 = vld [vmem:[#allocation5 + $0x5d0] sm:$0xff]  ;;  %v271_v47 = vld [vmem:[#allocation5 + $0x620] sm:$0xff] }
  0x76   :  { %v1365_v6 = vpack.c.bf16 %v248_v61, %v244_v59  ;;  %v265_v38 = vld [vmem:[#allocation5 + $0x5f0] sm:$0xff]  ;;  %v268_v39 = vld [vmem:[#allocation5 + $0x608] sm:$0xff]  ;;  %v278_v53 = vld [vmem:[#allocation5 + $0x658] sm:$0xff] }
  0x77   :  { %1344 = vmatpush1.bf16.msra.mxu0 %v1343_v3  ;;  %v243_v3 = vld [vmem:[#allocation5 + $0x540] sm:$0xff]  ;;  %v1503_v44 = vpack.c.bf16 %v265_v38, %v261_v36  ;;  %v269_v48 = vld [vmem:[#allocation5 + $0x610] sm:$0xff]  ;;  %v276_v51 = vld [vmem:[#allocation5 + $0x648] sm:$0xff] }
  0x78   :  { %1472 = vmatpush1.bf16.msra.mxu1 %v1471_v4  ;;  %1346 = vmatprep.subr.bf16.mxu0 %v1345_v5  ;;  %v247_v4 = vld [vmem:[#allocation5 + $0x560] sm:$0xff]  ;;  %v1491_v5 = vpack.c.bf16 %v241_v58, %v237_v57  ;;  %v273_v50 = vld [vmem:[#allocation5 + $0x630] sm:$0xff]  ;;  %v282_v54 = vld [vmem:[#allocation5 + $0x678] sm:$0xff] }
  0x79   :  { %1474 = vmatprep.subr.bf16.mxu1 %v1473_v9  ;;  %v67_v9 = vld [vmem:[#allocation2 + $0x40] sm:$0xff]  ;;  %v1509_v61 = vpack.c.bf16 %v282_v54, %v278_v53  ;;  %v288_v0 = vld [vmem:[#allocation5 + $0x6a8] sm:$0xff]  ;;  %v286_v1 = vld [vmem:[#allocation5 + $0x698] sm:$0xff] }
  0x7a   :  { %396 = vmatmul.mubr.f32.vlgmr.msra.gmra.mrb[0].mxu0 %v59_v15  ;;  %v275_v58 = vld [vmem:[#allocation5 + $0x640] sm:$0xff]  ;;  %v292_v11 = vld [vmem:[#allocation5 + $0x6c8] sm:$0xff]  ;;  %v294_v13 = vld [vmem:[#allocation5 + $0x6d8] sm:$0xff] }
  0x7b   :  { %1348 = vmatpush1.bf16.msra.mxu0 %v1347_v16  ;;  %574 = vmatmul.mubr.f32.vlgmr.msra.gmra.mrb[0].mxu1 %v59_v15  ;;  %v258_v15 = vld [vmem:[#allocation5 + $0x5b8] sm:$0xff]  ;;  %v1367_v16 = vpack.c.bf16 %v247_v4, %v243_v3  ;;  %v279_v59 = vld [vmem:[#allocation5 + $0x660] sm:$0xff]  ;;  %v296_v12 = vld [vmem:[#allocation5 + $0x6e8] sm:$0xff] }
  0x7c   :  { %1476 = vmatpush1.bf16.msra.mxu1 %v1475_v17  ;;  %1350 = vmatprep.subr.bf16.mxu0 %v1349_v18  ;;  %v251_v17 = vld [vmem:[#allocation5 + $0x580] sm:$0xff]  ;;  %v72_v18 = vld [vmem:[#allocation2 + $0x68] sm:$0xff]  ;;  %v1497_v24 = vpack.c.bf16 %v258_v15, %v254_v14  ;;  %v1383_v3 = vpack.c.bf16 %v279_v59, %v275_v58  ;;  %v298_v14 = vld [vmem:[#allocation5 + $0x6f8] sm:$0xff] }
  0x7d   :  { %1478 = vmatprep.subr.bf16.mxu1 %v1477_v22  ;;  %401 = vmatprep.mubr.f32.mxu0 %v64_v62  ;;  %v253_v22 = vld [vmem:[#allocation5 + $0x590] sm:$0xff]  ;;  %v287_v7 = vld [vmem:[#allocation5 + $0x6a0] sm:$0xff]  ;;  %v306_v26 = vld [vmem:[#allocation5 + $0x738] sm:$0xff] }
  0x7e   :  { %579 = vmatprep.mubr.f32.mxu1 %v64_v62  ;;  %402 = vmatmul.mubr.f32.gmra.mrb[2].mxu0 %v63_v63  ;;  %v1499_v32 = vpack.c.bf16 %v257_v25, %v253_v22  ;;  %v281_v62 = vld [vmem:[#allocation5 + $0x670] sm:$0xff]  ;;  %v302_v25 = vld [vmem:[#allocation5 + $0x718] sm:$0xff]  ;;  %v312_v36 = vld [vmem:[#allocation5 + $0x768] sm:$0xff] }
  0x7f   :  { %1352 = vmatpush1.bf16.msra.mxu0 %v1351_v28  ;;  %580 = vmatmul.mubr.f32.gmra.mrb[2].mxu1 %v63_v63  ;;  %v262_v28 = vld [vmem:[#allocation5 + $0x5d8] sm:$0xff]  ;;  %v284_v63 = vld [vmem:[#allocation5 + $0x688] sm:$0xff]  ;;  %v297_v22 = vld [vmem:[#allocation5 + $0x6f0] sm:$0xff] }
  0x80   :  { %1480 = vmatpush1.bf16.msra.mxu1 %v1479_v29  ;;  %1354 = vmatprep.subr.bf16.mxu0 %v1353_v30  ;;  %v266_v29 = vld [vmem:[#allocation5 + $0x5f8] sm:$0xff]  ;;  %v1371_v30 = vpack.c.bf16 %v255_v21, %v251_v17  ;;  %v1389_v17 = vpack.c.bf16 %v296_v12, %v292_v11  ;;  %v1517_v21 = vpack.c.bf16 %v298_v14, %v294_v13  ;;  %v315_v54 = vld [vmem:[#allocation5 + $0x780] sm:$0xff]  ;;  %v321_v58 = vld [vmem:[#allocation5 + $0x7b0] sm:$0xff] }
  0x81   :  { %1482 = vmatprep.subr.bf16.mxu1 %v1481_v34  ;;  %407 = vmatprep.mubr.f32.mxu0 %v68_v8  ;;  %v259_v34 = vld [vmem:[#allocation5 + $0x5c0] sm:$0xff]  ;;  %v1501_v37 = vpack.c.bf16 %v266_v29, %v262_v28  ;;  %v314_v38 = vld [vmem:[#allocation5 + $0x778] sm:$0xff]  ;;  %v324_v59 = vld [vmem:[#allocation5 + $0x7c8] sm:$0xff] }
  0x82   :  { %585 = vmatprep.mubr.f32.mxu1 %v68_v8  ;;  %408 = vmatmul.mubr.f32.gmra.mrb[4].mxu0 %v67_v9  ;;  %v1375_v43 = vpack.c.bf16 %v263_v35, %v259_v34  ;;  %v285_v8 = vld [vmem:[#allocation5 + $0x690] sm:$0xff]  ;;  %v308_v35 = vld [vmem:[#allocation5 + $0x748] sm:$0xff] }
  0x83   :  { %1356 = vmatpush1.bf16.msra.mxu0 %v1355_v40  ;;  %586 = vmatmul.mubr.f32.gmra.mrb[4].mxu1 %v67_v9  ;;  %v272_v40 = vld [vmem:[#allocation5 + $0x628] sm:$0xff]  ;;  %v305_v34 = vld [vmem:[#allocation5 + $0x730] sm:$0xff] }
  0x84   :  { %1484 = vmatpush1.bf16.msra.mxu1 %v1483_v41  ;;  %1358 = vmatprep.subr.bf16.mxu0 %v1357_v42  ;;  %v270_v41 = vld [vmem:[#allocation5 + $0x618] sm:$0xff]  ;;  %v1377_v45 = vpack.c.bf16 %v272_v40, %v268_v39 }
  0x85   :  { %1486 = vmatprep.subr.bf16.mxu1 %v1485_v46  ;;  %413 = vmatprep.mubr.f32.mxu0 %v72_v18  ;;  %v274_v42 = vld [vmem:[#allocation5 + $0x638] sm:$0xff]  ;;  %v267_v46 = vld [vmem:[#allocation5 + $0x600] sm:$0xff] }
  0x86   :  { %591 = vmatprep.mubr.f32.mxu1 %v72_v18  ;;  %414 = vmatmul.mubr.f32.gmra.mrb[6].mxu0 %v71_v23  ;;  %v1505_v49 = vpack.c.bf16 %v274_v42, %v270_v41  ;;  %v291_v18 = vld [vmem:[#allocation5 + $0x6c0] sm:$0xff]  ;;  %v1397_v41 = vpack.c.bf16 %v312_v36, %v308_v35  ;;  %v65_v35 = vld [vmem:[#allocation2 + $0x30] sm:$0xff]  ;;  %v718_v36 = vld [vmem:[#allocation7 + $0x98] sm:$0xff] }
  0x87   :  { %1360 = vmatpush1.bf16.msra.mxu0 %v1359_v52  ;;  %592 = vmatmul.mubr.f32.gmra.mrb[6].mxu1 %v71_v23  ;;  %v280_v52 = vld [vmem:[#allocation5 + $0x668] sm:$0xff]  ;;  %v307_v42 = vld [vmem:[#allocation5 + $0x740] sm:$0xff] }
  0x88   :  { %1488 = vmatpush1.bf16.msra.mxu1 %v1487_v55  ;;  %1362 = vmatprep.subr.bf16.mxu0 %v1361_v56  ;;  %v1379_v55 = vpack.c.bf16 %v271_v47, %v267_v46  ;;  %v1507_v56 = vpack.c.bf16 %v273_v50, %v269_v48  ;;  %v1381_v57 = vpack.c.bf16 %v280_v52, %v276_v51  ;;  %v300_v23 = vld [vmem:[#allocation5 + $0x708] sm:$0xff]  ;;  %v313_v46 = vld [vmem:[#allocation5 + $0x770] sm:$0xff]  ;;  %v322_v50 = vld [vmem:[#allocation5 + $0x7b8] sm:$0xff] }
  0x89   :  { %1490 = vmatprep.subr.bf16.mxu1 %v1489_v60  ;;  %484 = vmatprep.mubr.f32.mxu0 %v62_v31  ;;  %v277_v60 = vld [vmem:[#allocation5 + $0x650] sm:$0xff]  ;;  %v316_v47 = vld [vmem:[#allocation5 + $0x788] sm:$0xff] }
  0x8a   :  { %662 = vmatprep.mubr.f32.mxu1 %v62_v31  ;;  %v1511_v4 = vpack.c.bf16 %v281_v62, %v277_v60  ;;  %v303_v31 = vld [vmem:[#allocation5 + $0x720] sm:$0xff]  ;;  %v320_v48 = vld [vmem:[#allocation5 + $0x7a8] sm:$0xff]  ;;  %v330_v62 = vld [vmem:[#allocation5 + $0x7f8] sm:$0xff] }
  0x8b   :  { %1364 = vmatpush1.bf16.msra.mxu0 %v1363_v2  ;;  %v290_v2 = vld [vmem:[#allocation5 + $0x6b8] sm:$0xff]  ;;  %v1401_v53 = vpack.c.bf16 %v320_v48, %v316_v47  ;;  %v328_v60 = vld [vmem:[#allocation5 + $0x7e8] sm:$0xff] }
  0x8c   :  { %1492 = vmatpush1.bf16.msra.mxu1 %v1491_v5  ;;  %1366 = vmatprep.subr.bf16.mxu0 %v1365_v6  ;;  %v1385_v5 = vpack.c.bf16 %v288_v0, %v284_v63  ;;  %v283_v6 = vld [vmem:[#allocation5 + $0x680] sm:$0xff]  ;;  %v1513_v9 = vpack.c.bf16 %v290_v2, %v286_v1  ;;  %v1405_v1 = vpack.c.bf16 %v328_v60, %v324_v59  ;;  %v724_v47 = vld [vmem:[#allocation7 + $0xc8] sm:$0xff]  ;;  %v729_v60 = vld [vmem:[#allocation7 + $0xf0] sm:$0xff] }
  0x8d   :  { %1494 = vmatprep.subr.bf16.mxu1 %v1493_v10  ;;  %v289_v10 = vld [vmem:[#allocation5 + $0x6b0] sm:$0xff]  ;;  %v1387_v15 = vpack.c.bf16 %v287_v7, %v283_v6  ;;  %v323_v2 = vld [vmem:[#allocation5 + $0x7c0] sm:$0xff]  ;;  %v700_v7 = vld [vmem:[#allocation7 + $0x8] sm:$0xff] }
  0x8e   :  { %v329_v6 = vld [vmem:[#allocation5 + $0x7f0] sm:$0xff]  ;;  %v728_v48 = vld [vmem:[#allocation7 + $0xe8] sm:$0xff] }
  0x8f   :  { %1368 = vmatpush1.bf16.msra.mxu0 %v1367_v16  ;;  %v1515_v16 = vpack.c.bf16 %v289_v10, %v285_v8  ;;  %v704_v8 = vld [vmem:[#allocation7 + $0x28] sm:$0xff]  ;;  %v706_v10 = vld [vmem:[#allocation7 + $0x38] sm:$0xff] }
  0x90   :  { %1496 = vmatpush1.bf16.msra.mxu1 %v1495_v19  ;;  %1370 = vmatprep.subr.bf16.mxu0 %v1369_v20  ;;  %v295_v19 = vld [vmem:[#allocation5 + $0x6e0] sm:$0xff]  ;;  %v293_v20 = vld [vmem:[#allocation5 + $0x6d0] sm:$0xff]  ;;  %v1537_v13 = vpack.c.bf16 %v704_v8, %v700_v7 }
  0x91   :  { %1498 = vmatprep.subr.bf16.mxu1 %v1497_v24  ;;  %v304_v24 = vld [vmem:[#allocation5 + $0x728] sm:$0xff]  ;;  %v1391_v27 = vpack.c.bf16 %v295_v19, %v291_v18  ;;  %v1519_v28 = vpack.c.bf16 %v297_v22, %v293_v20  ;;  %v705_v18 = vld [vmem:[#allocation7 + $0x30] sm:$0xff]  ;;  %v710_v22 = vld [vmem:[#allocation7 + $0x58] sm:$0xff] }
  0x92   :  { %v1393_v29 = vpack.c.bf16 %v304_v24, %v300_v23  ;;  %v708_v19 = vld [vmem:[#allocation7 + $0x48] sm:$0xff]  ;;  %v714_v23 = vld [vmem:[#allocation7 + $0x78] sm:$0xff]  ;;  %v733_v7 = vld [vmem:[#allocation7 + $0x110] sm:$0xff] }
  0x93   :  { %1372 = vmatpush1.bf16.msra.mxu0 %v1371_v30  ;;  %v299_v30 = vld [vmem:[#allocation5 + $0x700] sm:$0xff]  ;;  %v712_v20 = vld [vmem:[#allocation7 + $0x68] sm:$0xff]  ;;  %v66_v24 = vld [vmem:[#allocation2 + $0x38] sm:$0xff] }
  0x94   :  { %1500 = vmatpush1.bf16.msra.mxu1 %v1499_v32  ;;  %1374 = vmatprep.subr.bf16.mxu0 %v1373_v33  ;;  %v301_v32 = vld [vmem:[#allocation5 + $0x710] sm:$0xff]  ;;  %v1521_v33 = vpack.c.bf16 %v306_v26, %v302_v25  ;;  %v1395_v39 = vpack.c.bf16 %v303_v31, %v299_v30  ;;  %v1669_v31 = vpack.c.bf16 %v714_v23, %v710_v22  ;;  %v748_v22 = vld [vmem:[#allocation7 + $0x188] sm:$0xff] }
  0x95   :  { %1502 = vmatprep.subr.bf16.mxu1 %v1501_v37  ;;  %v310_v37 = vld [vmem:[#allocation5 + $0x758] sm:$0xff]  ;;  %v1523_v40 = vpack.c.bf16 %v305_v34, %v301_v32  ;;  %v709_v30 = vld [vmem:[#allocation7 + $0x50] sm:$0xff]  ;;  %v720_v34 = vld [vmem:[#allocation7 + $0xa8] sm:$0xff] }
  0x96   :  { %v713_v32 = vld [vmem:[#allocation7 + $0x70] sm:$0xff]  ;;  %v752_v23 = vld [vmem:[#allocation7 + $0x1a8] sm:$0xff] }
  0x97   :  { %1376 = vmatpush1.bf16.msra.mxu0 %v1375_v43  ;;  %v311_v43 = vld [vmem:[#allocation5 + $0x760] sm:$0xff] }
  0x98   :  { %1504 = vmatpush1.bf16.msra.mxu1 %v1503_v44  ;;  %1378 = vmatprep.subr.bf16.mxu0 %v1377_v45  ;;  %v309_v44 = vld [vmem:[#allocation5 + $0x750] sm:$0xff]  ;;  %v1525_v45 = vpack.c.bf16 %v314_v38, %v310_v37  ;;  %v1399_v51 = vpack.c.bf16 %v311_v43, %v307_v42  ;;  %v722_v37 = vld [vmem:[#allocation7 + $0xb8] sm:$0xff]  ;;  %v715_v42 = vld [vmem:[#allocation7 + $0x80] sm:$0xff] }
  0x99   :  { %1506 = vmatprep.subr.bf16.mxu1 %v1505_v49  ;;  %v318_v49 = vld [vmem:[#allocation5 + $0x798] sm:$0xff]  ;;  %v1527_v52 = vpack.c.bf16 %v313_v46, %v309_v44  ;;  %v719_v43 = vld [vmem:[#allocation7 + $0xa0] sm:$0xff]  ;;  %v717_v44 = vld [vmem:[#allocation7 + $0x90] sm:$0xff] }
  0x9a   :  { %v70_v38 = vld [vmem:[#allocation2 + $0x58] sm:$0xff]  ;;  %v721_v46 = vld [vmem:[#allocation7 + $0xb0] sm:$0xff] }
  0x9b   :  { %1380 = vmatpush1.bf16.msra.mxu0 %v1379_v55  ;;  %v319_v55 = vld [vmem:[#allocation5 + $0x7a0] sm:$0xff] }
  0x9c   :  { %1508 = vmatpush1.bf16.msra.mxu1 %v1507_v56  ;;  %1382 = vmatprep.subr.bf16.mxu0 %v1381_v57  ;;  %v317_v56 = vld [vmem:[#allocation5 + $0x790] sm:$0xff]  ;;  %v1529_v57 = vpack.c.bf16 %v322_v50, %v318_v49  ;;  %v1403_v63 = vpack.c.bf16 %v319_v55, %v315_v54  ;;  %v726_v50 = vld [vmem:[#allocation7 + $0xd8] sm:$0xff]  ;;  %v1675_v54 = vpack.c.bf16 %v721_v46, %v717_v44  ;;  %v764_v46 = vld [vmem:[#allocation7 + $0x208] sm:$0xff] }
  0x9d   :  { %1510 = vmatprep.subr.bf16.mxu1 %v1509_v61  ;;  %v326_v61 = vld [vmem:[#allocation5 + $0x7d8] sm:$0xff]  ;;  %v1531_v0 = vpack.c.bf16 %v321_v58, %v317_v56  ;;  %v69_v49 = vld [vmem:[#allocation2 + $0x50] sm:$0xff]  ;;  %v1549_v55 = vpack.c.bf16 %v728_v48, %v724_v47  ;;  %v723_v56 = vld [vmem:[#allocation7 + $0xc0] sm:$0xff] }
  0x9e   :  { %v725_v58 = vld [vmem:[#allocation7 + $0xd0] sm:$0xff]  ;;  %v768_v47 = vld [vmem:[#allocation7 + $0x228] sm:$0xff]  ;;  %v766_v48 = vld [vmem:[#allocation7 + $0x218] sm:$0xff] }
  0x9f   :  { %1384 = vmatpush1.bf16.msra.mxu0 %v1383_v3  ;;  %v327_v3 = vld [vmem:[#allocation5 + $0x7e0] sm:$0xff] }
  0xa0   :  { %1512 = vmatpush1.bf16.msra.mxu1 %v1511_v4  ;;  %1386 = vmatprep.subr.bf16.mxu0 %v1385_v5  ;;  %v325_v4 = vld [vmem:[#allocation5 + $0x7d0] sm:$0xff]  ;;  %v1533_v5 = vpack.c.bf16 %v330_v62, %v326_v61  ;;  %v1407_v11 = vpack.c.bf16 %v327_v3, %v323_v2  ;;  %v732_v61 = vld [vmem:[#allocation7 + $0x108] sm:$0xff]  ;;  %v1679_v3 = vpack.c.bf16 %v729_v60, %v725_v58  ;;  %v774_v60 = vld [vmem:[#allocation7 + $0x258] sm:$0xff] }
  0xa1   :  { %1514 = vmatprep.subr.bf16.mxu1 %v1513_v9  ;;  %v702_v9 = vld [vmem:[#allocation7 + $0x18] sm:$0xff]  ;;  %v1535_v12 = vpack.c.bf16 %v329_v6, %v325_v4  ;;  %v736_v62 = vld [vmem:[#allocation7 + $0x128] sm:$0xff]  ;;  %v735_v6 = vld [vmem:[#allocation7 + $0x120] sm:$0xff] }
  0xa2   :  { %v1665_v14 = vpack.c.bf16 %v706_v10, %v702_v9  ;;  %v1553_v4 = vpack.c.bf16 %v736_v62, %v732_v61  ;;  %v737_v9 = vld [vmem:[#allocation7 + $0x130] sm:$0xff]  ;;  %v740_v10 = vld [vmem:[#allocation7 + $0x148] sm:$0xff]  ;;  %v778_v61 = vld [vmem:[#allocation7 + $0x278] sm:$0xff] }
  0xa3   :  { %1388 = vmatpush1.bf16.msra.mxu0 %v1387_v15  ;;  %v699_v15 = vld [vmem:[#allocation7] sm:$0xff]  ;;  %v772_v58 = vld [vmem:[#allocation7 + $0x248] sm:$0xff] }
  0xa4   :  { %1516 = vmatpush1.bf16.msra.mxu1 %v1515_v16  ;;  %1390 = vmatprep.subr.bf16.mxu0 %v1389_v17  ;;  %v703_v16 = vld [vmem:[#allocation7 + $0x20] sm:$0xff]  ;;  %v701_v17 = vld [vmem:[#allocation7 + $0x10] sm:$0xff] }
  0xa5   :  { %1518 = vmatprep.subr.bf16.mxu1 %v1517_v21  ;;  %v61_v21 = vld [vmem:[#allocation2 + $0x10] sm:$0xff]  ;;  %v1539_v25 = vpack.c.bf16 %v703_v16, %v699_v15  ;;  %v1667_v26 = vpack.c.bf16 %v705_v18, %v701_v17  ;;  %v1683_v15 = vpack.c.bf16 %v737_v9, %v733_v7  ;;  %v739_v17 = vld [vmem:[#allocation7 + $0x140] sm:$0xff]  ;;  %v784_v7 = vld [vmem:[#allocation7 + $0x2a8] sm:$0xff] }
  0xa6   :  { %v743_v18 = vld [vmem:[#allocation7 + $0x160] sm:$0xff]  ;;  %v786_v9 = vld [vmem:[#allocation7 + $0x2b8] sm:$0xff] }
  0xa7   :  { %1392 = vmatpush1.bf16.msra.mxu0 %v1391_v27  ;;  %v1541_v27 = vpack.c.bf16 %v712_v20, %v708_v19  ;;  %v741_v19 = vld [vmem:[#allocation7 + $0x150] sm:$0xff] }
  0xa8   :  { %1520 = vmatpush1.bf16.msra.mxu1 %v1519_v28  ;;  %1394 = vmatprep.subr.bf16.mxu0 %v1393_v29  ;;  %v707_v28 = vld [vmem:[#allocation7 + $0x40] sm:$0xff] }
  0xa9   :  { %1522 = vmatprep.subr.bf16.mxu1 %v1521_v33  ;;  %v711_v29 = vld [vmem:[#allocation7 + $0x60] sm:$0xff]  ;;  %v716_v33 = vld [vmem:[#allocation7 + $0x88] sm:$0xff] }
  0xab   :  { %1396 = vmatpush1.bf16.msra.mxu0 %v1395_v39  ;;  %v1543_v39 = vpack.c.bf16 %v711_v29, %v707_v28  ;;  %v1561_v28 = vpack.c.bf16 %v752_v23, %v748_v22  ;;  %v747_v29 = vld [vmem:[#allocation7 + $0x180] sm:$0xff] }
  0xac   :  { %1524 = vmatpush1.bf16.msra.mxu1 %v1523_v40  ;;  %1398 = vmatprep.subr.bf16.mxu0 %v1397_v41  ;;  %v1671_v40 = vpack.c.bf16 %v713_v32, %v709_v30  ;;  %v1545_v41 = vpack.c.bf16 %v720_v34, %v716_v33  ;;  %v751_v30 = vld [vmem:[#allocation7 + $0x1a0] sm:$0xff]  ;;  %v753_v33 = vld [vmem:[#allocation7 + $0x1b0] sm:$0xff]  ;;  %v756_v34 = vld [vmem:[#allocation7 + $0x1c8] sm:$0xff] }
  0xad   :  { %1526 = vmatprep.subr.bf16.mxu1 %v1525_v45  ;;  %v1673_v45 = vpack.c.bf16 %v722_v37, %v718_v36  ;;  %v758_v36 = vld [vmem:[#allocation7 + $0x1d8] sm:$0xff] }
  0xae   :  { %v762_v37 = vld [vmem:[#allocation7 + $0x1f8] sm:$0xff] }
  0xaf   :  { %1400 = vmatpush1.bf16.msra.mxu0 %v1399_v51  ;;  %v730_v51 = vld [vmem:[#allocation7 + $0xf8] sm:$0xff]  ;;  %v1693_v44 = vpack.c.bf16 %v762_v37, %v758_v36  ;;  %v795_v37 = vld [vmem:[#allocation7 + $0x300] sm:$0xff] }
  0xb0   :  { %1528 = vmatpush1.bf16.msra.mxu1 %v1527_v52  ;;  %1402 = vmatprep.subr.bf16.mxu0 %v1401_v53  ;;  %v74_v52 = vld [vmem:[#allocation2 + $0x78] sm:$0xff]  ;;  %v1547_v53 = vpack.c.bf16 %v719_v43, %v715_v42  ;;  %v1677_v59 = vpack.c.bf16 %v730_v51, %v726_v50  ;;  %v759_v42 = vld [vmem:[#allocation7 + $0x1e0] sm:$0xff]  ;;  %v757_v43 = vld [vmem:[#allocation7 + $0x1d0] sm:$0xff] }
  0xb1   :  { %1530 = vmatprep.subr.bf16.mxu1 %v1529_v57  ;;  %v727_v57 = vld [vmem:[#allocation7 + $0xe0] sm:$0xff]  ;;  %v802_v36 = vld [vmem:[#allocation7 + $0x338] sm:$0xff] }
  0xb2   :  { %v1551_v2 = vpack.c.bf16 %v727_v57, %v723_v56  ;;  %v769_v57 = vld [vmem:[#allocation7 + $0x230] sm:$0xff] }
  0xb3   :  { %1404 = vmatpush1.bf16.msra.mxu0 %v1403_v63  ;;  %v73_v63 = vld [vmem:[#allocation2 + $0x70] sm:$0xff] }
  0xb4   :  { %1532 = vmatpush1.bf16.msra.mxu1 %v1531_v0  ;;  %1406 = vmatprep.subr.bf16.mxu0 %v1405_v1  ;;  %v734_v0 = vld [vmem:[#allocation7 + $0x118] sm:$0xff] }
  0xb5   :  { %1534 = vmatprep.subr.bf16.mxu1 %v1533_v5  ;;  %v738_v1 = vld [vmem:[#allocation7 + $0x138] sm:$0xff]  ;;  %v731_v5 = vld [vmem:[#allocation7 + $0x100] sm:$0xff] }
  0xb6   :  { %v1681_v8 = vpack.c.bf16 %v738_v1, %v734_v0  ;;  %v771_v1 = vld [vmem:[#allocation7 + $0x240] sm:$0xff] }
  0xb7   :  { %1408 = vmatpush1.bf16.msra.mxu0 %v1407_v11  ;;  %v744_v11 = vld [vmem:[#allocation7 + $0x168] sm:$0xff] }
  0xb8   :  { %1536 = vmatpush1.bf16.msra.mxu1 %v1535_v12  ;;  %1538 = vmatprep.subr.bf16.mxu0 %v1537_v13  ;;  %v742_v12 = vld [vmem:[#allocation7 + $0x158] sm:$0xff]  ;;  %v1557_v16 = vpack.c.bf16 %v744_v11, %v740_v10 }
  0xb9   :  { %1666 = vmatprep.subr.bf16.mxu1 %v1665_v14  ;;  %v746_v13 = vld [vmem:[#allocation7 + $0x178] sm:$0xff]  ;;  %v1555_v14 = vpack.c.bf16 %v735_v6, %v731_v5  ;;  %v777_v5 = vld [vmem:[#allocation7 + $0x270] sm:$0xff]  ;;  %v780_v6 = vld [vmem:[#allocation7 + $0x288] sm:$0xff] }
  0xba   :  { %485 = vmatmul.mubr.f32.vlgmr.msra.gmra.mrb[0].mxu0 %v61_v21  ;;  %v1685_v20 = vpack.c.bf16 %v746_v13, %v742_v12  ;;  %v1577_v12 = vpack.c.bf16 %v784_v7, %v780_v6  ;;  %v779_v13 = vld [vmem:[#allocation7 + $0x280] sm:$0xff]  ;;  %v822_v6 = vld [vmem:[#allocation7 + $0x3d8] sm:$0xff] }
  0xbb   :  { %663 = vmatmul.mubr.f32.vlgmr.msra.gmra.mrb[0].mxu1 %v61_v21  ;;  %490 = vmatprep.mubr.f32.mxu0 %v66_v24  ;;  %v745_v21 = vld [vmem:[#allocation7 + $0x170] sm:$0xff] }
  0xbc   :  { %668 = vmatprep.mubr.f32.mxu1 %v66_v24  ;;  %1540 = vmatpush1.bf16.msra.mxu0 %v1539_v25  ;;  %v750_v24 = vld [vmem:[#allocation7 + $0x198] sm:$0xff] }
  0xbd   :  { %1668 = vmatpush1.bf16.msra.mxu1 %v1667_v26  ;;  %1542 = vmatprep.subr.bf16.mxu0 %v1541_v27  ;;  %v754_v25 = vld [vmem:[#allocation7 + $0x1b8] sm:$0xff]  ;;  %v1559_v26 = vpack.c.bf16 %v743_v18, %v739_v17  ;;  %v1687_v27 = vpack.c.bf16 %v745_v21, %v741_v19  ;;  %v785_v17 = vld [vmem:[#allocation7 + $0x2b0] sm:$0xff]  ;;  %v788_v18 = vld [vmem:[#allocation7 + $0x2c8] sm:$0xff] }
  0xbe   :  { %491 = vmatmul.mubr.f32.gmra.mrb[2].mxu0 %v65_v35  ;;  %1670 = vmatprep.subr.bf16.mxu1 %v1669_v31  ;;  %v749_v31 = vld [vmem:[#allocation7 + $0x190] sm:$0xff]  ;;  %v1689_v32 = vpack.c.bf16 %v754_v25, %v750_v24  ;;  %v792_v19 = vld [vmem:[#allocation7 + $0x2e8] sm:$0xff]  ;;  %v794_v21 = vld [vmem:[#allocation7 + $0x2f8] sm:$0xff] }
  0xbf   :  { %669 = vmatmul.mubr.f32.gmra.mrb[2].mxu1 %v65_v35  ;;  %496 = vmatprep.mubr.f32.mxu0 %v70_v38  ;;  %v760_v35 = vld [vmem:[#allocation7 + $0x1e8] sm:$0xff]  ;;  %v1581_v24 = vpack.c.bf16 %v792_v19, %v788_v18  ;;  %v787_v25 = vld [vmem:[#allocation7 + $0x2c0] sm:$0xff]  ;;  %v830_v18 = vld [vmem:[#allocation7 + $0x418] sm:$0xff] }
  0xc0   :  { %674 = vmatprep.mubr.f32.mxu1 %v70_v38  ;;  %1544 = vmatpush1.bf16.msra.mxu0 %v1543_v39  ;;  %v1563_v38 = vpack.c.bf16 %v751_v30, %v747_v29  ;;  %v1691_v39 = vpack.c.bf16 %v753_v33, %v749_v31  ;;  %v793_v29 = vld [vmem:[#allocation7 + $0x2f0] sm:$0xff]  ;;  %v800_v33 = vld [vmem:[#allocation7 + $0x328] sm:$0xff] }
  0xc1   :  { %1672 = vmatpush1.bf16.msra.mxu1 %v1671_v40  ;;  %1546 = vmatprep.subr.bf16.mxu0 %v1545_v41  ;;  %v1565_v40 = vpack.c.bf16 %v760_v35, %v756_v34  ;;  %v755_v41 = vld [vmem:[#allocation7 + $0x1c0] sm:$0xff]  ;;  %v798_v34 = vld [vmem:[#allocation7 + $0x318] sm:$0xff] }
  0xc2   :  { %497 = vmatmul.mubr.f32.gmra.mrb[4].mxu0 %v69_v49  ;;  %1674 = vmatprep.subr.bf16.mxu1 %v1673_v45  ;;  %v761_v45 = vld [vmem:[#allocation7 + $0x1f0] sm:$0xff]  ;;  %v1567_v50 = vpack.c.bf16 %v759_v42, %v755_v41 }
  0xc3   :  { %675 = vmatmul.mubr.f32.gmra.mrb[4].mxu1 %v69_v49  ;;  %502 = vmatprep.mubr.f32.mxu0 %v74_v52  ;;  %v770_v49 = vld [vmem:[#allocation7 + $0x238] sm:$0xff]  ;;  %v1695_v51 = vpack.c.bf16 %v761_v45, %v757_v43  ;;  %v797_v41 = vld [vmem:[#allocation7 + $0x310] sm:$0xff]  ;;  %v808_v45 = vld [vmem:[#allocation7 + $0x368] sm:$0xff] }
  0xc4   :  { %680 = vmatprep.mubr.f32.mxu1 %v74_v52  ;;  %1548 = vmatpush1.bf16.msra.mxu0 %v1547_v53  ;;  %v1569_v52 = vpack.c.bf16 %v768_v47, %v764_v46  ;;  %v763_v53 = vld [vmem:[#allocation7 + $0x200] sm:$0xff]  ;;  %v1697_v56 = vpack.c.bf16 %v770_v49, %v766_v48  ;;  %v801_v42 = vld [vmem:[#allocation7 + $0x330] sm:$0xff]  ;;  %v806_v46 = vld [vmem:[#allocation7 + $0x358] sm:$0xff] }
  0xc5   :  { %1676 = vmatpush1.bf16.msra.mxu1 %v1675_v54  ;;  %1550 = vmatprep.subr.bf16.mxu0 %v1549_v55  ;;  %v767_v54 = vld [vmem:[#allocation7 + $0x220] sm:$0xff]  ;;  %v765_v55 = vld [vmem:[#allocation7 + $0x210] sm:$0xff]  ;;  %v1715_v43 = vpack.c.bf16 %v801_v42, %v797_v41  ;;  %v810_v48 = vld [vmem:[#allocation7 + $0x378] sm:$0xff] }
  0xc6   :  { %503 = vmatmul.mubr.f32.gmra.mrb[6].mxu0 %v73_v63  ;;  %1678 = vmatprep.subr.bf16.mxu1 %v1677_v59  ;;  %v776_v59 = vld [vmem:[#allocation7 + $0x268] sm:$0xff]  ;;  %v1571_v62 = vpack.c.bf16 %v767_v54, %v763_v53  ;;  %v803_v49 = vld [vmem:[#allocation7 + $0x340] sm:$0xff]  ;;  %v805_v53 = vld [vmem:[#allocation7 + $0x350] sm:$0xff] }
  0xc7   :  { %681 = vmatmul.mubr.f32.gmra.mrb[6].mxu1 %v73_v63  ;;  %v1699_v63 = vpack.c.bf16 %v769_v57, %v765_v55  ;;  %v1573_v0 = vpack.c.bf16 %v776_v59, %v772_v58  ;;  %v809_v54 = vld [vmem:[#allocation7 + $0x370] sm:$0xff]  ;;  %v816_v57 = vld [vmem:[#allocation7 + $0x3a8] sm:$0xff]  ;;  %v814_v58 = vld [vmem:[#allocation7 + $0x398] sm:$0xff] }
  0xc8   :  { %1552 = vmatpush1.bf16.msra.mxu0 %v1551_v2  ;;  %v775_v2 = vld [vmem:[#allocation7 + $0x260] sm:$0xff]  ;;  %v1719_v55 = vpack.c.bf16 %v809_v54, %v805_v53  ;;  %v838_v53 = vld [vmem:[#allocation7 + $0x458] sm:$0xff] }
  0xc9   :  { %1680 = vmatpush1.bf16.msra.mxu1 %v1679_v3  ;;  %1554 = vmatprep.subr.bf16.mxu0 %v1553_v4  ;;  %v773_v3 = vld [vmem:[#allocation7 + $0x250] sm:$0xff]  ;;  %v1701_v4 = vpack.c.bf16 %v778_v61, %v774_v60  ;;  %v1575_v10 = vpack.c.bf16 %v775_v2, %v771_v1  ;;  %v818_v60 = vld [vmem:[#allocation7 + $0x3b8] sm:$0xff]  ;;  %v811_v61 = vld [vmem:[#allocation7 + $0x380] sm:$0xff] }
  0xca   :  { %1682 = vmatprep.subr.bf16.mxu1 %v1681_v8  ;;  %v782_v8 = vld [vmem:[#allocation7 + $0x298] sm:$0xff]  ;;  %v1703_v11 = vpack.c.bf16 %v777_v5, %v773_v3  ;;  %v813_v1 = vld [vmem:[#allocation7 + $0x390] sm:$0xff]  ;;  %v824_v5 = vld [vmem:[#allocation7 + $0x3e8] sm:$0xff] }
  0xcb   :  { %v817_v2 = vld [vmem:[#allocation7 + $0x3b0] sm:$0xff]  ;;  %v842_v54 = vld [vmem:[#allocation7 + $0x478] sm:$0xff] }
  0xcc   :  { %1556 = vmatpush1.bf16.msra.mxu0 %v1555_v14  ;;  %v783_v14 = vld [vmem:[#allocation7 + $0x2a0] sm:$0xff]  ;;  %v1723_v3 = vpack.c.bf16 %v817_v2, %v813_v1  ;;  %v1733_v2 = vpack.c.bf16 %v842_v54, %v838_v53  ;;  %v882_v53 = vld [vmem:[#allocation7 + $0x5b8] sm:$0xff] }
  0xcd   :  { %1684 = vmatpush1.bf16.msra.mxu1 %v1683_v15  ;;  %1558 = vmatprep.subr.bf16.mxu0 %v1557_v16  ;;  %v781_v15 = vld [vmem:[#allocation7 + $0x290] sm:$0xff]  ;;  %v1705_v16 = vpack.c.bf16 %v786_v9, %v782_v8  ;;  %v1579_v22 = vpack.c.bf16 %v783_v14, %v779_v13  ;;  %v826_v8 = vld [vmem:[#allocation7 + $0x3f8] sm:$0xff]  ;;  %v819_v9 = vld [vmem:[#allocation7 + $0x3c0] sm:$0xff] }
  0xce   :  { %1686 = vmatprep.subr.bf16.mxu1 %v1685_v20  ;;  %v790_v20 = vld [vmem:[#allocation7 + $0x2d8] sm:$0xff]  ;;  %v1707_v23 = vpack.c.bf16 %v785_v17, %v781_v15  ;;  %v821_v13 = vld [vmem:[#allocation7 + $0x3d0] sm:$0xff]  ;;  %v832_v17 = vld [vmem:[#allocation7 + $0x428] sm:$0xff] }
  0xcf   :  { %v825_v14 = vld [vmem:[#allocation7 + $0x3f0] sm:$0xff] }
  0xd0   :  { %1560 = vmatpush1.bf16.msra.mxu0 %v1559_v26  ;;  %v791_v26 = vld [vmem:[#allocation7 + $0x2e0] sm:$0xff]  ;;  %v1727_v15 = vpack.c.bf16 %v825_v14, %v821_v13  ;;  %v849_v13 = vld [vmem:[#allocation7 + $0x4b0] sm:$0xff]  ;;  %v852_v14 = vld [vmem:[#allocation7 + $0x4c8] sm:$0xff] }
  0xd1   :  { %1688 = vmatpush1.bf16.msra.mxu1 %v1687_v27  ;;  %1562 = vmatprep.subr.bf16.mxu0 %v1561_v28  ;;  %v1709_v27 = vpack.c.bf16 %v794_v21, %v790_v20  ;;  %v789_v28 = vld [vmem:[#allocation7 + $0x2d0] sm:$0xff]  ;;  %v1583_v30 = vpack.c.bf16 %v791_v26, %v787_v25  ;;  %v834_v20 = vld [vmem:[#allocation7 + $0x438] sm:$0xff] }
  0xd2   :  { %1690 = vmatprep.subr.bf16.mxu1 %v1689_v32  ;;  %v1711_v31 = vpack.c.bf16 %v793_v29, %v789_v28  ;;  %v796_v32 = vld [vmem:[#allocation7 + $0x308] sm:$0xff]  ;;  %v1729_v21 = vpack.c.bf16 %v834_v20, %v830_v18  ;;  %v851_v20 = vld [vmem:[#allocation7 + $0x4c0] sm:$0xff] }
  0xd3   :  { %v1585_v35 = vpack.c.bf16 %v800_v33, %v796_v32 }
  0xd4   :  { %1564 = vmatpush1.bf16.msra.mxu0 %v1563_v38  ;;  %v799_v38 = vld [vmem:[#allocation7 + $0x320] sm:$0xff] }
  0xd5   :  { %1692 = vmatpush1.bf16.msra.mxu1 %v1691_v39  ;;  %1566 = vmatprep.subr.bf16.mxu0 %v1565_v40  ;;  %v1713_v39 = vpack.c.bf16 %v802_v36, %v798_v34  ;;  %v1587_v40 = vpack.c.bf16 %v799_v38, %v795_v37 }
  0xd6   :  { %1694 = vmatprep.subr.bf16.mxu1 %v1693_v44  ;;  %v804_v44 = vld [vmem:[#allocation7 + $0x348] sm:$0xff] }
  0xd7   :  { %v1589_v47 = vpack.c.bf16 %v808_v45, %v804_v44  ;;  %v829_v44 = vld [vmem:[#allocation7 + $0x410] sm:$0xff] }
  0xd8   :  { %1568 = vmatpush1.bf16.msra.mxu0 %v1567_v50  ;;  %v807_v50 = vld [vmem:[#allocation7 + $0x360] sm:$0xff]  ;;  %v833_v45 = vld [vmem:[#allocation7 + $0x430] sm:$0xff] }
  0xd9   :  { %1696 = vmatpush1.bf16.msra.mxu1 %v1695_v51  ;;  %1570 = vmatprep.subr.bf16.mxu0 %v1569_v52  ;;  %v1717_v51 = vpack.c.bf16 %v810_v48, %v806_v46  ;;  %v1591_v52 = vpack.c.bf16 %v807_v50, %v803_v49  ;;  %v836_v49 = vld [vmem:[#allocation7 + $0x448] sm:$0xff] }
  0xda   :  { %1698 = vmatprep.subr.bf16.mxu1 %v1697_v56  ;;  %v812_v56 = vld [vmem:[#allocation7 + $0x388] sm:$0xff] }
  0xdb   :  { %v1593_v59 = vpack.c.bf16 %v816_v57, %v812_v56 }
  0xdc   :  { %1572 = vmatpush1.bf16.msra.mxu0 %v1571_v62  ;;  %v815_v62 = vld [vmem:[#allocation7 + $0x3a0] sm:$0xff] }
  0xdd   :  { %1700 = vmatpush1.bf16.msra.mxu1 %v1699_v63  ;;  %1574 = vmatprep.subr.bf16.mxu0 %v1573_v0  ;;  %v1721_v63 = vpack.c.bf16 %v818_v60, %v814_v58  ;;  %v1595_v0 = vpack.c.bf16 %v815_v62, %v811_v61  ;;  %v1731_v58 = vpack.c.bf16 %v833_v45, %v829_v44  ;;  %v839_v60 = vld [vmem:[#allocation7 + $0x460] sm:$0xff]  ;;  %v837_v62 = vld [vmem:[#allocation7 + $0x450] sm:$0xff] }
  0xde   :  { %1702 = vmatprep.subr.bf16.mxu1 %v1701_v4  ;;  %v820_v4 = vld [vmem:[#allocation7 + $0x3c8] sm:$0xff]  ;;  %v867_v44 = vld [vmem:[#allocation7 + $0x540] sm:$0xff] }
  0xdf   :  { %v1597_v7 = vpack.c.bf16 %v824_v5, %v820_v4  ;;  %v846_v4 = vld [vmem:[#allocation7 + $0x498] sm:$0xff]  ;;  %v871_v45 = vld [vmem:[#allocation7 + $0x560] sm:$0xff] }
  0xe0   :  { %1576 = vmatpush1.bf16.msra.mxu0 %v1575_v10  ;;  %v823_v10 = vld [vmem:[#allocation7 + $0x3e0] sm:$0xff]  ;;  %v850_v5 = vld [vmem:[#allocation7 + $0x4b8] sm:$0xff]  ;;  %v1623_v54 = vpack.c.bf16 %v871_v45, %v867_v44  ;;  %v909_v45 = vld [vmem:[#allocation7 + $0x690] sm:$0xff] }
  0xe1   :  { %1704 = vmatpush1.bf16.msra.mxu1 %v1703_v11  ;;  %1578 = vmatprep.subr.bf16.mxu0 %v1577_v12  ;;  %v1725_v11 = vpack.c.bf16 %v826_v8, %v822_v6  ;;  %v1599_v12 = vpack.c.bf16 %v823_v10, %v819_v9  ;;  %v843_v8 = vld [vmem:[#allocation7 + $0x480] sm:$0xff] }
  0xe2   :  { %1706 = vmatprep.subr.bf16.mxu1 %v1705_v16  ;;  %v828_v16 = vld [vmem:[#allocation7 + $0x408] sm:$0xff]  ;;  %v847_v9 = vld [vmem:[#allocation7 + $0x4a0] sm:$0xff] }
  0xe3   :  { %v1601_v19 = vpack.c.bf16 %v832_v17, %v828_v16  ;;  %v854_v16 = vld [vmem:[#allocation7 + $0x4d8] sm:$0xff]  ;;  %v1611_v18 = vpack.c.bf16 %v847_v9, %v843_v8  ;;  %v885_v9 = vld [vmem:[#allocation7 + $0x5d0] sm:$0xff] }
  0xe4   :  { %1580 = vmatpush1.bf16.msra.mxu0 %v1579_v22  ;;  %v858_v17 = vld [vmem:[#allocation7 + $0x4f8] sm:$0xff] }
  0xe5   :  { %1708 = vmatpush1.bf16.msra.mxu1 %v1707_v23  ;;  %1582 = vmatprep.subr.bf16.mxu0 %v1581_v24 }
  0xe6   :  { %1710 = vmatprep.subr.bf16.mxu1 %v1709_v27 }
  0xe8   :  { %1584 = vmatpush1.bf16.msra.mxu0 %v1583_v30 }
  0xe9   :  { %1712 = vmatpush1.bf16.msra.mxu1 %v1711_v31  ;;  %1586 = vmatprep.subr.bf16.mxu0 %v1585_v35 }
  0xea   :  { %1714 = vmatprep.subr.bf16.mxu1 %v1713_v39  ;;  %v827_v39 = vld [vmem:[#allocation7 + $0x400] sm:$0xff] }
  0xec   :  { %1588 = vmatpush1.bf16.msra.mxu0 %v1587_v40 }
  0xed   :  { %1716 = vmatpush1.bf16.msra.mxu1 %v1715_v43  ;;  %1590 = vmatprep.subr.bf16.mxu0 %v1589_v47  ;;  %v831_v43 = vld [vmem:[#allocation7 + $0x420] sm:$0xff] }
  0xee   :  { %1718 = vmatprep.subr.bf16.mxu1 %v1717_v51  ;;  %v1603_v57 = vpack.c.bf16 %v831_v43, %v827_v39  ;;  %v872_v39 = vld [vmem:[#allocation7 + $0x568] sm:$0xff] }
  0xf0   :  { %1592 = vmatpush1.bf16.msra.mxu0 %v1591_v52  ;;  %v840_v52 = vld [vmem:[#allocation7 + $0x468] sm:$0xff] }
  0xf1   :  { %1720 = vmatpush1.bf16.msra.mxu1 %v1719_v55  ;;  %1594 = vmatprep.subr.bf16.mxu0 %v1593_v59  ;;  %v835_v59 = vld [vmem:[#allocation7 + $0x440] sm:$0xff]  ;;  %v1605_v1 = vpack.c.bf16 %v840_v52, %v836_v49  ;;  %v873_v49 = vld [vmem:[#allocation7 + $0x570] sm:$0xff]  ;;  %v878_v52 = vld [vmem:[#allocation7 + $0x598] sm:$0xff] }
  0xf2   :  { %1722 = vmatprep.subr.bf16.mxu1 %v1721_v63  ;;  %v841_v63 = vld [vmem:[#allocation7 + $0x470] sm:$0xff]  ;;  %v1607_v6 = vpack.c.bf16 %v839_v60, %v835_v59  ;;  %v1753_v60 = vpack.c.bf16 %v882_v53, %v878_v52  ;;  %v915_v53 = vld [vmem:[#allocation7 + $0x6c0] sm:$0xff] }
  0xf4   :  { %1596 = vmatpush1.bf16.msra.mxu0 %v1595_v0  ;;  %v844_v0 = vld [vmem:[#allocation7 + $0x488] sm:$0xff] }
  0xf5   :  { %1724 = vmatpush1.bf16.msra.mxu1 %v1723_v3  ;;  %1598 = vmatprep.subr.bf16.mxu0 %v1597_v7  ;;  %v848_v3 = vld [vmem:[#allocation7 + $0x4a8] sm:$0xff]  ;;  %v1735_v7 = vpack.c.bf16 %v841_v63, %v837_v62  ;;  %v881_v62 = vld [vmem:[#allocation7 + $0x5b0] sm:$0xff] }
  0xf6   :  { %1726 = vmatprep.subr.bf16.mxu1 %v1725_v11  ;;  %v1609_v10 = vpack.c.bf16 %v848_v3, %v844_v0  ;;  %v1737_v11 = vpack.c.bf16 %v850_v5, %v846_v4  ;;  %v884_v63 = vld [vmem:[#allocation7 + $0x5c8] sm:$0xff]  ;;  %v883_v5 = vld [vmem:[#allocation7 + $0x5c0] sm:$0xff] }
  0xf7   :  { %v888_v0 = vld [vmem:[#allocation7 + $0x5e8] sm:$0xff] }
  0xf8   :  { %1600 = vmatpush1.bf16.msra.mxu0 %v1599_v12  ;;  %v845_v12 = vld [vmem:[#allocation7 + $0x490] sm:$0xff] }
  0xf9   :  { %1728 = vmatpush1.bf16.msra.mxu1 %v1727_v15  ;;  %1602 = vmatprep.subr.bf16.mxu0 %v1601_v19  ;;  %v856_v15 = vld [vmem:[#allocation7 + $0x4e8] sm:$0xff]  ;;  %v1739_v19 = vpack.c.bf16 %v849_v13, %v845_v12  ;;  %v894_v13 = vld [vmem:[#allocation7 + $0x618] sm:$0xff] }
  0xfa   :  { %1730 = vmatprep.subr.bf16.mxu1 %v1729_v21  ;;  %v855_v21 = vld [vmem:[#allocation7 + $0x4e0] sm:$0xff]  ;;  %v896_v12 = vld [vmem:[#allocation7 + $0x628] sm:$0xff] }
 0x18d   :  { %v486_v22 = vpop.f32.mrb[0].mxu0 }
 0x18e   :  { %v664_v23 = vpop.f32.mrb[0].mxu1  ;;  %v488_v24 = vpop.f32.mrb[1].mxu0 }
 0x18f   :  { %v666_v25 = vpop.f32.mrb[1].mxu1 }
 0x191   :  { %v492_v26 = vpop.f32.mrb[2].mxu0 }
 0x192   :  { %v687_v27 = vmax.f32 %v486_v22, %v492_v26  ;;  %v670_v28 = vpop.f32.mrb[2].mxu1  ;;  %v494_v29 = vpop.f32.mrb[3].mxu0  ;;  %v1613_v22 = vpack.c.bf16 %v856_v15, %v852_v14  ;;  %v860_v26 = vld [vmem:[#allocation7 + $0x508] sm:$0xff]  ;;  %v898_v14 = vld [vmem:[#allocation7 + $0x638] sm:$0xff] }
 0x193   :  { %v689_v30 = vmax.f32 %v664_v23, %v670_v28  ;;  %v688_v31 = vmax.f32 %v488_v24, %v494_v29  ;;  %v672_v32 = vpop.f32.mrb[3].mxu1  ;;  %v1741_v23 = vpack.c.bf16 %v858_v17, %v854_v16  ;;  %v853_v24 = vld [vmem:[#allocation7 + $0x4d0] sm:$0xff]  ;;  %v862_v28 = vld [vmem:[#allocation7 + $0x518] sm:$0xff]  ;;  %v891_v17 = vld [vmem:[#allocation7 + $0x600] sm:$0xff] }
 0x194   :  { %v690_v33 = vmax.f32 %v666_v25, %v672_v32  ;;  %v857_v25 = vld [vmem:[#allocation7 + $0x4f0] sm:$0xff]  ;;  %v866_v29 = vld [vmem:[#allocation7 + $0x538] sm:$0xff]  ;;  %v859_v32 = vld [vmem:[#allocation7 + $0x500] sm:$0xff] }
 0x195   :  { %v498_v34 = vpop.f32.mrb[4].mxu0 }
 0x196   :  { %v500_v35 = vpop.f32.mrb[5].mxu0  ;;  %v676_v36 = vpop.f32.mrb[4].mxu1 }
 0x197   :  { %v678_v37 = vpop.f32.mrb[5].mxu1 }
 0x199   :  { %v504_v38 = vpop.f32.mrb[6].mxu0 }
 0x19a   :  { %v691_v40 = vmax.f32 %v498_v34, %v504_v38  ;;  %v682_v41 = vpop.f32.mrb[6].mxu1  ;;  %v506_v42 = vpop.f32.mrb[7].mxu0  ;;  %v868_v38 = vld [vmem:[#allocation7 + $0x548] sm:$0xff] }
 0x19b   :  { %v693_v46 = vmax.f32 %v676_v36, %v682_v41  ;;  %v692_v47 = vmax.f32 %v500_v35, %v506_v42  ;;  %v684_v48 = vpop.f32.mrb[7].mxu1  ;;  %v1745_v35 = vpack.c.bf16 %v866_v29, %v862_v28  ;;  %v861_v36 = vld [vmem:[#allocation7 + $0x510] sm:$0xff]  ;;  %v874_v41 = vld [vmem:[#allocation7 + $0x578] sm:$0xff]  ;;  %v899_v29 = vld [vmem:[#allocation7 + $0x640] sm:$0xff] }
 0x19c   :  { %v695_v50 = vmax.f32 %v687_v27, %v691_v40  ;;  %v694_v51 = vmax.f32 %v678_v37, %v684_v48  ;;  %v864_v27 = vld [vmem:[#allocation7 + $0x528] sm:$0xff]  ;;  %v865_v37 = vld [vmem:[#allocation7 + $0x530] sm:$0xff]  ;;  %v870_v40 = vld [vmem:[#allocation7 + $0x558] sm:$0xff] }
 0x19d   :  { %v2000_v55 = vmax.f32 %v689_v30, %v693_v46  ;;  %v696_v56 = vmax.f32 %v688_v31, %v692_v47  ;;  %v1615_v30 = vpack.c.bf16 %v855_v21, %v851_v20  ;;  %v1743_v31 = vpack.c.bf16 %v857_v25, %v853_v24  ;;  %v869_v48 = vld [vmem:[#allocation7 + $0x550] sm:$0xff]  ;;  %v904_v24 = vld [vmem:[#allocation7 + $0x668] sm:$0xff]  ;;  %v902_v25 = vld [vmem:[#allocation7 + $0x658] sm:$0xff] }
 0x19e   :  { %v698_v61 = vmax.f32 %v690_v33, %v694_v51  ;;  %v863_v33 = vld [vmem:[#allocation7 + $0x520] sm:$0xff]  ;;  %v1617_v34 = vpack.c.bf16 %v864_v27, %v860_v26  ;;  %v1747_v43 = vpack.c.bf16 %v865_v37, %v861_v36  ;;  %v1621_v46 = vpack.c.bf16 %v872_v39, %v868_v38  ;;  %v880_v51 = vld [vmem:[#allocation7 + $0x5a8] sm:$0xff]  ;;  %v893_v21 = vld [vmem:[#allocation7 + $0x610] sm:$0xff] }
 0x19f   :  { %1041 = vmatprep.mubr.f32.mxu0 %v696_v56  ;;  %1183 = vmatprep.mubr.f32.mxu1 %v696_v56  ;;  %v1619_v42 = vpack.c.bf16 %v863_v33, %v859_v32  ;;  %v1749_v47 = vpack.c.bf16 %v874_v41, %v870_v40  ;;  %v1751_v56 = vpack.c.bf16 %v873_v49, %v869_v48  ;;  %v906_v26 = vld [vmem:[#allocation7 + $0x678] sm:$0xff]  ;;  %v901_v33 = vld [vmem:[#allocation7 + $0x650] sm:$0xff]  ;;  %v912_v36 = vld [vmem:[#allocation7 + $0x6a8] sm:$0xff] }
 0x1a0   :  { %1042 = vmatmul.mubr.f32.vlgmr.msra.gmra.mrb[8].mxu0 %v695_v50  ;;  %1184 = vmatmul.mubr.f32.vlgmr.msra.gmra.mrb[8].mxu1 %v695_v50  ;;  %v876_v50 = vld [vmem:[#allocation7 + $0x588] sm:$0xff]  ;;  %v1761_v20 = vpack.c.bf16 %v898_v14, %v894_v13  ;;  %v1765_v32 = vpack.c.bf16 %v906_v26, %v902_v25  ;;  %v910_v37 = vld [vmem:[#allocation7 + $0x698] sm:$0xff]  ;;  %v907_v41 = vld [vmem:[#allocation7 + $0x680] sm:$0xff] }
 0x1a1   :  { %1604 = vmatpush1.bf16.msra.mxu0 %v1603_v57  ;;  %1732 = vmatpush1.bf16.msra.mxu1 %v1731_v58  ;;  %v875_v57 = vld [vmem:[#allocation7 + $0x580] sm:$0xff]  ;;  %v1625_v59 = vpack.c.bf16 %v880_v51, %v876_v50  ;;  %v914_v38 = vld [vmem:[#allocation7 + $0x6b8] sm:$0xff]  ;;  %v920_v48 = vld [vmem:[#allocation7 + $0x6e8] sm:$0xff] }
 0x1a2   :  { %1112 = vmatprep.mubr.f32.mxu0 %v698_v61  ;;  %1254 = vmatprep.mubr.f32.mxu1 %v698_v61  ;;  %v879_v58 = vld [vmem:[#allocation7 + $0x5a0] sm:$0xff]  ;;  %v877_v61 = vld [vmem:[#allocation7 + $0x590] sm:$0xff]  ;;  %v1769_v44 = vpack.c.bf16 %v914_v38, %v910_v37  ;;  %v918_v49 = vld [vmem:[#allocation7 + $0x6d8] sm:$0xff] }
 0x1a3   :  { %1606 = vmatprep.subr.bf16.mxu0 %v1605_v1  ;;  %1734 = vmatprep.subr.bf16.mxu1 %v1733_v2  ;;  %v886_v1 = vld [vmem:[#allocation7 + $0x5d8] sm:$0xff]  ;;  %v1627_v3 = vpack.c.bf16 %v879_v58, %v875_v57  ;;  %v1755_v4 = vpack.c.bf16 %v881_v62, %v877_v61  ;;  %v917_v58 = vld [vmem:[#allocation7 + $0x6d0] sm:$0xff]  ;;  %v928_v61 = vld [vmem:[#allocation7 + $0x728] sm:$0xff] }
 0x1a4   :  { %v890_v2 = vld [vmem:[#allocation7 + $0x5f8] sm:$0xff]  ;;  %v931_v14 = vld [vmem:[#allocation7 + $0x740] sm:$0xff] }
 0x1a5   :  { %1608 = vmatpush1.bf16.msra.mxu0 %v1607_v6  ;;  %1736 = vmatpush1.bf16.msra.mxu1 %v1735_v7  ;;  %v887_v6 = vld [vmem:[#allocation7 + $0x5e0] sm:$0xff]  ;;  %v1629_v7 = vpack.c.bf16 %v888_v0, %v884_v63  ;;  %v1757_v8 = vpack.c.bf16 %v890_v2, %v886_v1  ;;  %v922_v50 = vld [vmem:[#allocation7 + $0x6f8] sm:$0xff] }
 0x1a6   :  { %1610 = vmatprep.subr.bf16.mxu0 %v1609_v10  ;;  %1738 = vmatprep.subr.bf16.mxu1 %v1737_v11  ;;  %v889_v10 = vld [vmem:[#allocation7 + $0x5f0] sm:$0xff]  ;;  %v892_v11 = vld [vmem:[#allocation7 + $0x608] sm:$0xff]  ;;  %v1631_v15 = vpack.c.bf16 %v887_v6, %v883_v5  ;;  %v1773_v57 = vpack.c.bf16 %v922_v50, %v918_v49  ;;  %v926_v62 = vld [vmem:[#allocation7 + $0x718] sm:$0xff] }
 0x1a7   :  { %v1759_v16 = vpack.c.bf16 %v889_v10, %v885_v9  ;;  %v930_v63 = vld [vmem:[#allocation7 + $0x738] sm:$0xff]  ;;  %v923_v2 = vld [vmem:[#allocation7 + $0x700] sm:$0xff]  ;;  %v925_v6 = vld [vmem:[#allocation7 + $0x710] sm:$0xff] }
 0x1a8   :  { %v1777_v5 = vpack.c.bf16 %v930_v63, %v926_v62  ;;  %v936_v9 = vld [vmem:[#allocation7 + $0x768] sm:$0xff]  ;;  %v934_v10 = vld [vmem:[#allocation7 + $0x758] sm:$0xff]  ;;  %v939_v26 = vld [vmem:[#allocation7 + $0x780] sm:$0xff] }
 0x1a9   :  { %1612 = vmatpush1.bf16.msra.mxu0 %v1611_v18  ;;  %1740 = vmatpush1.bf16.msra.mxu1 %v1739_v19  ;;  %v895_v18 = vld [vmem:[#allocation7 + $0x620] sm:$0xff]  ;;  %v1633_v19 = vpack.c.bf16 %v896_v12, %v892_v11  ;;  %v938_v11 = vld [vmem:[#allocation7 + $0x778] sm:$0xff] }
 0x1aa   :  { %1614 = vmatprep.subr.bf16.mxu0 %v1613_v22  ;;  %1742 = vmatprep.subr.bf16.mxu1 %v1741_v23  ;;  %v897_v22 = vld [vmem:[#allocation7 + $0x630] sm:$0xff]  ;;  %v900_v23 = vld [vmem:[#allocation7 + $0x648] sm:$0xff]  ;;  %v1635_v27 = vpack.c.bf16 %v895_v18, %v891_v17  ;;  %v1781_v17 = vpack.c.bf16 %v938_v11, %v934_v10  ;;  %v947_v38 = vld [vmem:[#allocation7 + $0x7c0] sm:$0xff] }
 0x1ab   :  { %v1763_v28 = vpack.c.bf16 %v897_v22, %v893_v21  ;;  %v933_v18 = vld [vmem:[#allocation7 + $0x750] sm:$0xff]  ;;  %v944_v21 = vld [vmem:[#allocation7 + $0x7a8] sm:$0xff]  ;;  %v942_v22 = vld [vmem:[#allocation7 + $0x798] sm:$0xff] }
 0x1ac   :  { %v955_v50 = vld [vmem:[%s2022_s3] sm:$0xf]  ;;  %s1889_s3 = scalar_lea.vmem %s1272_s27, 512 }
 0x1ad   :  { %1616 = vmatpush1.bf16.msra.mxu0 %v1615_v30  ;;  %1744 = vmatpush1.bf16.msra.mxu1 %v1743_v31  ;;  %v903_v30 = vld [vmem:[#allocation7 + $0x660] sm:$0xff]  ;;  %v1637_v31 = vpack.c.bf16 %v904_v24, %v900_v23  ;;  %v946_v23 = vld [vmem:[#allocation7 + $0x7b8] sm:$0xff]  ;;  %p1890_p10 = scmp.ne.s32.totalorder %s1272_s27, %s1889_s3  ;;  %p1895_p12 = scmp.lt.s32.totalorder %s1889_s3, %s1889_s3 }
 0x1ae   :  { %1618 = vmatprep.subr.bf16.mxu0 %v1617_v34  ;;  %1746 = vmatprep.subr.bf16.mxu1 %v1745_v35  ;;  %v905_v34 = vld [vmem:[#allocation7 + $0x670] sm:$0xff]  ;;  %v908_v35 = vld [vmem:[#allocation7 + $0x688] sm:$0xff]  ;;  %v1639_v39 = vpack.c.bf16 %v903_v30, %v899_v29  ;;  %v1785_v29 = vpack.c.bf16 %v946_v23, %v942_v22 }
 0x1af   :  { %v1767_v40 = vpack.c.bf16 %v905_v34, %v901_v33  ;;  %v941_v30 = vld [vmem:[#allocation7 + $0x790] sm:$0xff]  ;;  %v952_v33 = vld [vmem:[#allocation7 + $0x7e8] sm:$0xff]  ;;  %v950_v34 = vld [vmem:[#allocation7 + $0x7d8] sm:$0xff]  ;;  %p1896_p13 = por %p1895_p12, %p1894_p11 }
 0x1b1   :  { %1620 = vmatpush1.bf16.msra.mxu0 %v1619_v42  ;;  %1748 = vmatpush1.bf16.msra.mxu1 %v1747_v43  ;;  %v911_v42 = vld [vmem:[#allocation7 + $0x6a0] sm:$0xff]  ;;  %v1641_v43 = vpack.c.bf16 %v912_v36, %v908_v35  ;;  %v954_v35 = vld [vmem:[#allocation7 + $0x7f8] sm:$0xff]  ;;  %p1897_p0 = pnand %p1896_p13, %p1890_p10 }
 0x1b2   :  { %1622 = vmatprep.subr.bf16.mxu0 %v1621_v46  ;;  %1750 = vmatprep.subr.bf16.mxu1 %v1749_v47  ;;  %v913_v46 = vld [vmem:[#allocation7 + $0x6b0] sm:$0xff]  ;;  %v916_v47 = vld [vmem:[#allocation7 + $0x6c8] sm:$0xff]  ;;  %v1643_v51 = vpack.c.bf16 %v911_v42, %v907_v41  ;;  %v951_v41 = vld [vmem:[#allocation7 + $0x7e0] sm:$0xff] }
 0x1b3   :  { %v1771_v52 = vpack.c.bf16 %v913_v46, %v909_v45  ;;  %v949_v42 = vld [vmem:[#allocation7 + $0x7d0] sm:$0xff]  ;;  %v957_v46 = vlaneseq }
 0x1b5   :  { %1624 = vmatpush1.bf16.msra.mxu0 %v1623_v54  ;;  %1752 = vmatpush1.bf16.msra.mxu1 %v1751_v56  ;;  %v919_v54 = vld [vmem:[#allocation7 + $0x6e0] sm:$0xff]  ;;  %v1645_v56 = vpack.c.bf16 %v920_v48, %v916_v47  ;;  %v958_v47 = vshrl.u32 %v957_v46, 7 }
 0x1b6   :  { %1626 = vmatprep.subr.bf16.mxu0 %v1625_v59  ;;  %1754 = vmatprep.subr.bf16.mxu1 %v1753_v60  ;;  %v921_v59 = vld [vmem:[#allocation7 + $0x6f0] sm:$0xff]  ;;  %v924_v60 = vld [vmem:[#allocation7 + $0x708] sm:$0xff]  ;;  %v1647_v0 = vpack.c.bf16 %v919_v54, %v915_v53 }
 0x1b7   :  { %v1775_v1 = vpack.c.bf16 %v921_v59, %v917_v58  ;;  %v959_v48 = vsub.s32 0, %v958_v47  ;;  %v967_v49 = vsub.s32 2, %v958_v47 }
 0x1b9   :  { %1628 = vmatpush1.bf16.msra.mxu0 %v1627_v3  ;;  %1756 = vmatpush1.bf16.msra.mxu1 %v1755_v4  ;;  %v927_v3 = vld [vmem:[#allocation7 + $0x720] sm:$0xff]  ;;  %v1649_v4 = vpack.c.bf16 %v928_v61, %v924_v60  ;;  %v960_v53 = vrot.slane %v955_v50, %v959_v48  ;;  %v968_v54 = vrot.slane %v955_v50, %v967_v49 }
 0x1ba   :  { %1630 = vmatprep.subr.bf16.mxu0 %v1629_v7  ;;  %1758 = vmatprep.subr.bf16.mxu1 %v1757_v8  ;;  %v929_v7 = vld [vmem:[#allocation7 + $0x730] sm:$0xff]  ;;  %v932_v8 = vld [vmem:[#allocation7 + $0x748] sm:$0xff]  ;;  %v1651_v12 = vpack.c.bf16 %v927_v3, %v923_v2 }
 0x1bb   :  { %v1779_v13 = vpack.c.bf16 %v929_v7, %v925_v6 }
 0x1bd   :  { %1632 = vmatpush1.bf16.msra.mxu0 %v1631_v15  ;;  %1760 = vmatpush1.bf16.msra.mxu1 %v1759_v16  ;;  %v935_v15 = vld [vmem:[#allocation7 + $0x760] sm:$0xff]  ;;  %v1653_v16 = vpack.c.bf16 %v936_v9, %v932_v8 }
 0x1be   :  { %1634 = vmatprep.subr.bf16.mxu0 %v1633_v19  ;;  %1762 = vmatprep.subr.bf16.mxu1 %v1761_v20  ;;  %v937_v19 = vld [vmem:[#allocation7 + $0x770] sm:$0xff]  ;;  %v940_v20 = vld [vmem:[#allocation7 + $0x788] sm:$0xff]  ;;  %v1655_v24 = vpack.c.bf16 %v935_v15, %v931_v14 }
 0x1bf   :  { %v1783_v25 = vpack.c.bf16 %v937_v19, %v933_v18 }
 0x1c1   :  { %1636 = vmatpush1.bf16.msra.mxu0 %v1635_v27  ;;  %1764 = vmatpush1.bf16.msra.mxu1 %v1763_v28  ;;  %v943_v27 = vld [vmem:[#allocation7 + $0x7a0] sm:$0xff]  ;;  %v1657_v28 = vpack.c.bf16 %v944_v21, %v940_v20 }
 0x1c2   :  { %1638 = vmatprep.subr.bf16.mxu0 %v1637_v31  ;;  %1766 = vmatprep.subr.bf16.mxu1 %v1765_v32  ;;  %v945_v31 = vld [vmem:[#allocation7 + $0x7b0] sm:$0xff]  ;;  %v948_v32 = vld [vmem:[#allocation7 + $0x7c8] sm:$0xff]  ;;  %v1659_v36 = vpack.c.bf16 %v943_v27, %v939_v26 }
 0x1c3   :  { %v1787_v37 = vpack.c.bf16 %v945_v31, %v941_v30 }
 0x1c5   :  { %1640 = vmatpush1.bf16.msra.mxu0 %v1639_v39  ;;  %1768 = vmatpush1.bf16.msra.mxu1 %v1767_v40  ;;  %v1661_v39 = vpack.c.bf16 %v952_v33, %v948_v32  ;;  %v1789_v40 = vpack.c.bf16 %v954_v35, %v950_v34 }
 0x1c6   :  { %1642 = vmatprep.subr.bf16.mxu0 %v1641_v43  ;;  %1770 = vmatprep.subr.bf16.mxu1 %v1769_v44  ;;  %v953_v43 = vld [vmem:[#allocation7 + $0x7f0] sm:$0xff]  ;;  %v1663_v44 = vpack.c.bf16 %v951_v41, %v947_v38 }
 0x1c7   :  { %v1791_v45 = vpack.c.bf16 %v953_v43, %v949_v42 }
 0x1c9   :  { %1644 = vmatpush1.bf16.msra.mxu0 %v1643_v51  ;;  %1772 = vmatpush1.bf16.msra.mxu1 %v1771_v52  ;;  %v963_v51 = vsub.s32 1, %v958_v47  ;;  %v971_v52 = vsub.s32 3, %v958_v47 }
 0x1ca   :  { %1646 = vmatprep.subr.bf16.mxu0 %v1645_v56  ;;  %1774 = vmatprep.subr.bf16.mxu1 %v1773_v57 }
 0x1cb   :  { %v964_v56 = vrot.slane %v955_v50, %v963_v51  ;;  %v972_v57 = vrot.slane %v955_v50, %v971_v52 }
 0x1cd   :  { %1648 = vmatpush1.bf16.msra.mxu0 %v1647_v0  ;;  %1776 = vmatpush1.bf16.msra.mxu1 %v1775_v1 }
 0x1ce   :  { %1650 = vmatprep.subr.bf16.mxu0 %v1649_v4  ;;  %1778 = vmatprep.subr.bf16.mxu1 %v1777_v5 }
 0x1d1   :  { %1652 = vmatpush1.bf16.msra.mxu0 %v1651_v12  ;;  %1780 = vmatpush1.bf16.msra.mxu1 %v1779_v13 }
 0x1d2   :  { %1654 = vmatprep.subr.bf16.mxu0 %v1653_v16  ;;  %1782 = vmatprep.subr.bf16.mxu1 %v1781_v17 }
 0x1d5   :  { %1656 = vmatpush1.bf16.msra.mxu0 %v1655_v24  ;;  %1784 = vmatpush1.bf16.msra.mxu1 %v1783_v25 }
 0x1d6   :  { %1658 = vmatprep.subr.bf16.mxu0 %v1657_v28  ;;  %1786 = vmatprep.subr.bf16.mxu1 %v1785_v29 }
 0x1d9   :  { %1660 = vmatpush1.bf16.msra.mxu0 %v1659_v36  ;;  %1788 = vmatpush1.bf16.msra.mxu1 %v1787_v37 }
 0x1da   :  { %1662 = vmatprep.subr.bf16.mxu0 %v1661_v39  ;;  %1790 = vmatprep.subr.bf16.mxu1 %v1789_v40 }
 0x1dd   :  { %1664 = vmatpush1.bf16.msra.mxu0 %v1663_v44  ;;  %1792 = vmatpush1.bf16.msra.mxu1 %v1791_v45 }
 0x1e0   :  { %1113 = vmatmul.mubr.f32.vlgmr.msra.gmra.mrb[8].mxu0 %v2000_v55  ;;  %1255 = vmatmul.mubr.f32.vlgmr.msra.gmra.mrb[8].mxu1 %v2000_v55 }
 0x2b3   :  { %v1114_v58 = vpop.f32.mrb[8].mxu0  ;;  %v1256_v59 = vpop.f32.mrb[8].mxu1 }
 0x2b4   :  { %v1793_v60 = vadd.f32 %v1114_v58, %v960_v53  ;;  %v1795_v55 = vadd.f32 %v1256_v59, %v968_v54  ;;  %v1116_v61 = vpop.f32.mrb[9].mxu0  ;;  %v1258_v62 = vpop.f32.mrb[9].mxu1 }
 0x2b5   :  { %v1794_v63 = vadd.f32 %v1116_v61, %v964_v56  ;;  %v1796_v0 = vadd.f32 %v1258_v62, %v972_v57 }
 0x2b6   :  { %1261 = vst [vmem:[#allocation8] sm:$0xff] %v1793_v60  ;;  %1263 = vst [vmem:[#allocation8 + $0x10] sm:$0xff] %v1795_v55 }
 0x2b7   :  { %1262 = vst [vmem:[#allocation8 + $0x8] sm:$0xff] %v1794_v63  ;;  %1264 = vst [vmem:[#allocation8 + $0x18] sm:$0xff] %v1796_v0 }
 0x2b8   :  { %1900 = shalt.err (!%p1897_p0)
}
 0x2b9   :  { %s1901_s30 = scalar_lea.hbm %s2023_s4, 512 }
 0x2ba   :  { %p1902_p1 = scmp.ne.s32.totalorder %s2023_s4, %s1901_s30  ;;  %p1905_p2 = scmp.lt.u32.totalorder %s1901_s30, %s2023_s4 }
 0x2bc   :  { %p1907_p3 = pnand %p1905_p2, %p1902_p1 }
 0x2be   :  { %1910 = shalt.err (!%p1907_p3)
}
 0x2bf   :  { %1274 = dma.vmem_to_hbm [thread:$0]  %s1272_s27, 512, %s2023_s4, [#allocation4]  }
 0x2c0   :  { %1915 = dma.done.wait [#allocation4], 512  }
 0x2c1   :  { %1916 = vsyncadd [#allocation4], 4294966784 }
 0x2c2   :  { %1278 = vsyncpa [#allocation3], 1 }
 0x2c3   :  { %1279 = vsyncpa [#allocation6], 1 }
 0x2c4   :  { %1280 = vsyncpa [#allocation4], 1 }

</bundles_post_ra>
